<compile_context>
chip_gen: v5e
topology: v5e:2x2
jax: 0.10.0
libtpu: 0.0.40
codegen_flags: <defaults>
</compile_context>

<pallas_src>
import math

import jax
import jax.numpy as jnp
from jax.experimental import pallas as pl
from jax.experimental.pallas import tpu as pltpu


def _round_up(n, m):
    return ((n + m - 1) // m) * m


def discriminator_kernel(x_ref, w1_ref, b1_ref, w2_ref, b2_ref, w3_ref, b3_ref,
                         o_ref):
    """Fused 3-layer MLP forward on one (batch_tile, size_in) tile.

    Matmuls hit the MXU with f32 accumulation; bias/ReLU are f32 on the VPU;
    the final H1->1 layer is a VPU multiply + lane reduction.
    """
    mm_dtype = w1_ref.dtype  # matmul operand dtype (bf16 by default)

    # Layer 1
    x = x_ref[...].astype(mm_dtype)
    h = jnp.dot(x, w1_ref[...], preferred_element_type=jnp.float32) + b1_ref[...]
    h = jnp.maximum(h, 0.0)

    # Layer 2
    h = jnp.dot(h.astype(mm_dtype), w2_ref[...],
                preferred_element_type=jnp.float32) + b2_ref[...]
    h = jnp.maximum(h, 0.0)

    # Layer 3 (H1 -> 1): VPU mul + lane reduce (free-ish next to the MXU work)
    logit = jnp.sum(h * w3_ref[...], axis=-1) + b3_ref[0, 0]   # (batch_tile,)

    # Lane-dense store: batch lives on the lane axis of the output block.
    o_ref[0, 0, :] = logit.astype(o_ref.dtype)


def discriminator_forward(x, params, *, batch_tile=256,
                          matmul_dtype=jnp.bfloat16):
    """x: (B, size_in) float32 -> (B, 1) float32.

    params: w1 (size_in, H0), b1 (1, H0), w2 (H0, H1), b2 (1, H1),
            w3 (1, H1), b3 (1, 1).

    Use batch_tile=128 on TPU v5e (M=128 already saturates its 128x128 MXU and
    keeps the (bt, H) f32 intermediates out of spill territory); 256 on
    v6e/v7x.  Pass matmul_dtype=jnp.float32 to disable the bf16 operand cast.
    """
    B, size_in = x.shape
    w1 = params["w1"].astype(matmul_dtype)
    w2 = params["w2"].astype(matmul_dtype)
    b1, b2 = params["b1"], params["b2"]
    w3, b3 = params["w3"], params["b3"]
    h0 = w1.shape[1]
    h1 = w2.shape[1]

    # Pick the batch tile: at most `batch_tile`, a multiple of 16, >= 16.
    bt = min(batch_tile, _round_up(B, 16))
    bt = max(16, _round_up(bt, 16))
    b_pad = _round_up(B, bt)
    if b_pad != B:
        x = jnp.pad(x, ((0, b_pad - B), (0, 0)))
    num_tiles = b_pad // bt

    out3d = pl.pallas_call(
        discriminator_kernel,
        out_shape=jax.ShapeDtypeStruct((num_tiles, 1, bt), x.dtype),
        grid_spec=pltpu.PrefetchScalarGridSpec(
            num_scalar_prefetch=0,
            grid=(num_tiles,),
            in_specs=[
                # batch-tiled activations
                pl.BlockSpec((bt, size_in), lambda i: (i, 0)),
                # weights / biases: full blocks, resident across all grid steps
                pl.BlockSpec((size_in, h0), lambda i: (0, 0)),
                pl.BlockSpec((1, h0), lambda i: (0, 0)),
                pl.BlockSpec((h0, h1), lambda i: (0, 0)),
                pl.BlockSpec((1, h1), lambda i: (0, 0)),
                pl.BlockSpec((1, h1), lambda i: (0, 0)),
                pl.BlockSpec((1, 1), lambda i: (0, 0)),
            ],
            # lane-dense output: last dim = batch_tile (multiple of 128)
            out_specs=pl.BlockSpec((1, 1, bt), lambda i: (i, 0, 0)),
        ),
        compiler_params=pltpu.CompilerParams(
            dimension_semantics=("parallel",)),
    )(x, w1, b1, w2, b2, w3, b3)

    # Layout plumbing: (num_tiles, 1, bt) -> (B, 1), dropping padded rows.
    return out3d.reshape(-1)[:B][:, None]


def init_discriminator_params(key, size_in, size_hidden=(500, 500)):
    """Deterministic init mirroring torch.nn.Linear default:
    U(-1/sqrt(fan_in), 1/sqrt(fan_in)) for both weight and bias."""
    # TODO(synk): kernel is specialized to the default two-hidden-layer config.
    assert len(size_hidden) == 2
    dims = [size_in] + list(size_hidden)
    params = {}
    for idx in range(len(size_hidden)):
        fan_in, fan_out = dims[idx], dims[idx + 1]
        key, kw, kb = jax.random.split(key, 3)
        bound = 1.0 / math.sqrt(fan_in)
        params[f"w{idx + 1}"] = jax.random.uniform(
            kw, (fan_in, fan_out), jnp.float32, -bound, bound)
        params[f"b{idx + 1}"] = jax.random.uniform(
            kb, (1, fan_out), jnp.float32, -bound, bound)
    # Final Linear(H_last, 1): weight kept as a (1, H_last) row.
    fan_in = size_hidden[-1]
    key, kw, kb = jax.random.split(key, 3)
    bound = 1.0 / math.sqrt(fan_in)
    params["w3"] = jax.random.uniform(kw, (1, fan_in), jnp.float32, -bound, bound)
    params["b3"] = jax.random.uniform(kb, (1, 1), jnp.float32, -bound, bound)
    return params


def reference_forward(x, params, *, matmul_dtype=jnp.float32):
    """Pure-JAX reference; matmul_dtype mirrors the kernel's operand cast."""
    w1 = params["w1"].astype(matmul_dtype)
    w2 = params["w2"].astype(matmul_dtype)
    h = jnp.dot(x.astype(matmul_dtype), w1,
                preferred_element_type=jnp.float32) + params["b1"]
    h = jnp.maximum(h, 0.0)
    h = jnp.dot(h.astype(matmul_dtype), w2,
                preferred_element_type=jnp.float32) + params["b2"]
    h = jnp.maximum(h, 0.0)
    return jnp.sum(h * params["w3"], axis=-1, keepdims=True) + params["b3"]


if __name__ == "__main__":
    key = jax.random.PRNGKey(0)
    k_x, k_p = jax.random.split(key)

    B = 300            # deliberately NOT a multiple of batch_tile (tail handling)
    SIZE_IN = 128
    HIDDEN = (256, 256)

    x = jax.random.normal(k_x, (B, SIZE_IN), jnp.float32)
    params = init_discriminator_params(k_p, SIZE_IN, HIDDEN)

    out = discriminator_forward(x, params, batch_tile=256)
    out = jax.block_until_ready(out)
    assert out.shape == (B, 1), out.shape

    # Reference with the same bf16 matmul-operand cast -> tight tolerance.
    ref_bf16 = reference_forward(x, params, matmul_dtype=jnp.bfloat16)
    assert jnp.allclose(out, ref_bf16, atol=2e-3, rtol=2e-3), (
        float(jnp.max(jnp.abs(out - ref_bf16))))

    # Loose sanity check against the full-f32 reference.
    ref_f32 = reference_forward(x, params, matmul_dtype=jnp.float32)
    assert jnp.allclose(out, ref_f32, atol=3e-2, rtol=3e-2), (
        float(jnp.max(jnp.abs(out - ref_f32))))

    print("KERNEL_OK")
</pallas_src>

<mosaic_0001>
module attributes {stable_mosaic.version = 11 : i64} {
  func.func @discriminator_kernel(%arg0: i32, %arg1: memref<256x128xf32, #tpu.memory_space<vmem>>, %arg2: memref<128x256xbf16, #tpu.memory_space<vmem>>, %arg3: memref<1x256xf32, #tpu.memory_space<vmem>>, %arg4: memref<256x256xbf16, #tpu.memory_space<vmem>>, %arg5: memref<1x256xf32, #tpu.memory_space<vmem>>, %arg6: memref<1x256xf32, #tpu.memory_space<vmem>>, %arg7: memref<1x1xf32, #tpu.memory_space<vmem>>, %arg8: memref<1x1x256xf32, #tpu.memory_space<vmem>>) attributes {dimension_semantics = [#tpu.dimension_semantics<parallel>], iteration_bounds = array<i64: 2>, scalar_prefetch = 0 : i64, scratch_operands = 0 : i64, tpu.core_type = #tpu.core_type<tc>, window_params = [{transform_indices = @transform_0, window_bounds = array<i64: 256, 128>}, {pipeline_mode = #tpu.pipeline_mode<synchronous>, transform_indices = @transform_1, window_bounds = array<i64: 128, 256>}, {pipeline_mode = #tpu.pipeline_mode<synchronous>, transform_indices = @transform_2, window_bounds = array<i64: 1, 256>}, {pipeline_mode = #tpu.pipeline_mode<synchronous>, transform_indices = @transform_3, window_bounds = array<i64: 256, 256>}, {pipeline_mode = #tpu.pipeline_mode<synchronous>, transform_indices = @transform_4, window_bounds = array<i64: 1, 256>}, {pipeline_mode = #tpu.pipeline_mode<synchronous>, transform_indices = @transform_5, window_bounds = array<i64: 1, 256>}, {pipeline_mode = #tpu.pipeline_mode<synchronous>, transform_indices = @transform_6, window_bounds = array<i64: 1, 1>}, {transform_indices = @transform_7, window_bounds = array<i64: 1, 1, 256>}]} {
    %c0 = arith.constant 0 : index
    %c0_0 = arith.constant 0 : index
    %0 = vector.load %arg1[%c0, %c0_0] : memref<256x128xf32, #tpu.memory_space<vmem>>, vector<256x128xf32>
    %1 = arith.truncf %0 : vector<256x128xf32> to vector<256x128xbf16>
    %c0_1 = arith.constant 0 : index
    %c0_2 = arith.constant 0 : index
    %2 = vector.load %arg2[%c0_1, %c0_2] : memref<128x256xbf16, #tpu.memory_space<vmem>>, vector<128x256xbf16>
    %cst = arith.constant dense<0.000000e+00> : vector<256x256xf32>
    %3 = tpu.matmul %1, %2, %cst {dimension_numbers = #tpu.dot_dimension_numbers<[1], [0], [0], [1], [0, 0, 1, 1], [], []>} : vector<256x128xbf16>, vector<128x256xbf16>, vector<256x256xf32> -> vector<256x256xf32>
    %c0_3 = arith.constant 0 : index
    %c0_4 = arith.constant 0 : index
    %4 = vector.load %arg3[%c0_3, %c0_4] : memref<1x256xf32, #tpu.memory_space<vmem>>, vector<1x256xf32>
    %5 = vector.broadcast %4 : vector<1x256xf32> to vector<256x256xf32>
    %6 = arith.addf %3, %5 : vector<256x256xf32>
    %cst_5 = arith.constant 0.000000e+00 : f32
    %7 = vector.broadcast %cst_5 : f32 to vector<256x256xf32>
    %8 = arith.maximumf %6, %7 : vector<256x256xf32>
    %9 = arith.truncf %8 : vector<256x256xf32> to vector<256x256xbf16>
    %c0_6 = arith.constant 0 : index
    %c0_7 = arith.constant 0 : index
    %10 = vector.load %arg4[%c0_6, %c0_7] : memref<256x256xbf16, #tpu.memory_space<vmem>>, vector<256x256xbf16>
    %cst_8 = arith.constant dense<0.000000e+00> : vector<256x256xf32>
    %11 = tpu.matmul %9, %10, %cst_8 {dimension_numbers = #tpu.dot_dimension_numbers<[1], [0], [0], [1], [0, 0, 1, 1], [], []>} : vector<256x256xbf16>, vector<256x256xbf16>, vector<256x256xf32> -> vector<256x256xf32>
    %c0_9 = arith.constant 0 : index
    %c0_10 = arith.constant 0 : index
    %12 = vector.load %arg5[%c0_9, %c0_10] : memref<1x256xf32, #tpu.memory_space<vmem>>, vector<1x256xf32>
    %13 = vector.broadcast %12 : vector<1x256xf32> to vector<256x256xf32>
    %14 = arith.addf %11, %13 : vector<256x256xf32>
    %cst_11 = arith.constant 0.000000e+00 : f32
    %15 = vector.broadcast %cst_11 : f32 to vector<256x256xf32>
    %16 = arith.maximumf %14, %15 : vector<256x256xf32>
    %c0_12 = arith.constant 0 : index
    %c0_13 = arith.constant 0 : index
    %17 = vector.load %arg6[%c0_12, %c0_13] : memref<1x256xf32, #tpu.memory_space<vmem>>, vector<1x256xf32>
    %18 = vector.broadcast %17 : vector<1x256xf32> to vector<256x256xf32>
    %19 = arith.mulf %16, %18 : vector<256x256xf32>
    %cst_14 = arith.constant dense<0.000000e+00> : vector<256xf32>
    %20 = vector.multi_reduction <add>, %19, %cst_14 [1] : vector<256x256xf32> to vector<256xf32>
    %c0_15 = arith.constant 0 : index
    %c0_16 = arith.constant 0 : index
    %21 = vector.load %arg7[%c0_15, %c0_16] : memref<1x1xf32, #tpu.memory_space<vmem>>, vector<1x1xf32>
    %22 = vector.extract %21[0, 0] : f32 from vector<1x1xf32>
    %23 = vector.broadcast %22 : f32 to vector<256xf32>
    %24 = arith.addf %20, %23 : vector<256xf32>
    %c0_17 = arith.constant 0 : index
    %c0_18 = arith.constant 0 : index
    %c0_19 = arith.constant 0 : index
    %25 = vector.load %arg8[%c0_17, %c0_18, %c0_19] : memref<1x1x256xf32, #tpu.memory_space<vmem>>, vector<1x1x256xf32>
    %26 = vector.shape_cast %25 : vector<1x1x256xf32> to vector<256xf32>
    %27 = vector.shape_cast %24 : vector<256xf32> to vector<1x1x256xf32>
    tpu.vector_store %arg8[%c0_17, %c0_18, %c0_19], %27 {strides = array<i32>} : memref<1x1x256xf32, #tpu.memory_space<vmem>>, vector<1x1x256xf32>,
    return
  }
  func.func @transform_0(%arg0: i32) -> (i32, i32) {
    %c0_i32 = arith.constant 0 : i32
    %c0_i32_0 = arith.constant 0 : i32
    return %arg0, %c0_i32 : i32, i32
  }
  func.func @transform_1(%arg0: i32) -> (i32, i32) {
    %c0_i32 = arith.constant 0 : i32
    %c0_i32_0 = arith.constant 0 : i32
    %c0_i32_1 = arith.constant 0 : i32
    return %c0_i32, %c0_i32_0 : i32, i32
  }
  func.func @transform_2(%arg0: i32) -> (i32, i32) {
    %c0_i32 = arith.constant 0 : i32
    %c0_i32_0 = arith.constant 0 : i32
    %c0_i32_1 = arith.constant 0 : i32
    return %c0_i32, %c0_i32_0 : i32, i32
  }
  func.func @transform_3(%arg0: i32) -> (i32, i32) {
    %c0_i32 = arith.constant 0 : i32
    %c0_i32_0 = arith.constant 0 : i32
    %c0_i32_1 = arith.constant 0 : i32
    return %c0_i32, %c0_i32_0 : i32, i32
  }
  func.func @transform_4(%arg0: i32) -> (i32, i32) {
    %c0_i32 = arith.constant 0 : i32
    %c0_i32_0 = arith.constant 0 : i32
    %c0_i32_1 = arith.constant 0 : i32
    return %c0_i32, %c0_i32_0 : i32, i32
  }
  func.func @transform_5(%arg0: i32) -> (i32, i32) {
    %c0_i32 = arith.constant 0 : i32
    %c0_i32_0 = arith.constant 0 : i32
    %c0_i32_1 = arith.constant 0 : i32
    return %c0_i32, %c0_i32_0 : i32, i32
  }
  func.func @transform_6(%arg0: i32) -> (i32, i32) {
    %c0_i32 = arith.constant 0 : i32
    %c0_i32_0 = arith.constant 0 : i32
    %c0_i32_1 = arith.constant 0 : i32
    return %c0_i32, %c0_i32_0 : i32, i32
  }
  func.func @transform_7(%arg0: i32) -> (i32, i32, i32) {
    %c0_i32 = arith.constant 0 : i32
    %c0_i32_0 = arith.constant 0 : i32
    %c0_i32_1 = arith.constant 0 : i32
    return %arg0, %c0_i32, %c0_i32_0 : i32, i32, i32
  }
}

</mosaic_0001>

<bundles_post_ra>
// kernel: tpu_custom_call.1
= control target key start
LH: loop header
LB: loop body
LE: loop exit
PB: predicated region body
PF: predicated region fallthrough
CT: control target
= control target key end

     0   :  { %s3784_s0 = inlined_call_operand.hbm [shape: f32[512,128], index: 0, kind: input, shape index: {}]   ;;  %s3785_s1 = inlined_call_operand.hbm [shape: bf16[128,256], index: 1, kind: input, shape index: {}]   ;;  %s3786_s2 = inlined_call_operand.vmem [shape: f32[1,256], index: 2, kind: input, shape index: {}]   ;;  %s3787_s3 = inlined_call_operand.hbm [shape: bf16[256,256], index: 3, kind: input, shape index: {}]   ;;  %s3788_s4 = inlined_call_operand.vmem [shape: f32[1,256], index: 4, kind: input, shape index: {}]   ;;  %s3789_s5 = inlined_call_operand.vmem [shape: f32[1,256], index: 5, kind: input, shape index: {}]   ;;  %s3790_s6 = inlined_call_operand.<no memory space> [shape: f32[1,1], index: 6, kind: input, shape index: {}]   ;;  %s3791_s7 = inlined_call_operand.hbm [shape: f32[2,1,256], index: 7, kind: output, shape index: {}]  }
   0x1   :  { %v12_v0 = vstv %s3790_s6 }
   0x2   :  { %13 = vst [vmem:[#allocation2] sm:$0x1] %v12_v0 }
   0x3   :  { %14 = vsyncpa [#allocation4], 0 }
   0x4   :  { %16 = vsyncpa [#allocation4 + $0x1], 0 }
   0x5   :  { %17 = vsyncpa [#allocation7], 0 }
   0x6   :  { %18 = vsyncpa [#allocation5], 0 }
   0x7   :  { %20 = vsyncpa [#allocation5 + $0x1], 0  ;;  %s3024_s26 = smov 0   ;;  %s3026_s27 = smov 0  }
   0x8   :  { %s3028_s28 = smov 0   ;;  %s3030_s29 = smov 0  }
   0x9 LB: > { %s3045_s6 = sadd.s32 4294967295, %s2974_s29   ;;  %s2465_s30 = sadd.s32 4294967294, %s2974_s29   ;;  %s2974_s29 = sphi %s3030_s29, %s3805_s29   ;;  %s2970_s28 = sphi %s3028_s28, %s3804_s28   ;;  %s2966_s27 = sphi %s3026_s27, %s3803_s27   ;;  %s2962_s26 = sphi %s3024_s26, %s3802_s26  }
   0xa   : > { %p46_p0 = scmp.ne.s32.totalorder %s2966_s27, %s2962_s26  ;;  %p47_p1 = scmp.eq.s32.totalorder %s3045_s6, 0 }
   0xb   : > { %p196_p2 = scmp.eq.s32.totalorder %s3045_s6, 1  ;;  %p202_p3 = scmp.eq.s32.totalorder %s2465_s30, 1 }
   0xc   : > { %p3054_p4 = por %p47_p1, %p46_p0  ;;  %p2466_p5 = scmp.ge.s32.totalorder %s2974_s29, 1 }
   0xd   : > { %p3059_p6 = por %p202_p3, %p46_p0  ;;  %p209_p7 = scmp.lt.s32.totalorder %s2974_s29, 3 }
   0xe   : > { %s220_s12 = sshll.u32 %s3785_s1, 4  ;;  %s2976_s14 = smov [#allocation6]   ;;  %s221_s12 = int_to_ptr.hbm [resolvable:$true] %s220_s12 }
   0xf   : > { %p3067_p8 = pnand %p2466_p5, %p209_p7  ;;  %s222_s15 = sshll.u32 %s2976_s14, 4  ;;  %s223_s15 = int_to_ptr.vmem [resolvable:$true] %s222_s15 }
  0x10   : > { %s237_s18 = sshll.u32 %s3787_s3, 4  ;;  %s3792_s19 = smov 128   ;;  %s238_s18 = int_to_ptr.hbm [resolvable:$true] %s237_s18 }
  0x11   : > { %p2753_p9 = pneg %p3067_p8  ;;  %s3793_s20 = smov 8  }
  0x12   : > { %s2979_s21 = smov [#allocation8]   ;;  %s3086_s23 = sadd.s32 1, %s2974_s29  }
  0x13   : > { %p2754_p10 = pnand %p2753_p9, %p47_p1  ;;  %s239_s22 = sshll.u32 %s2979_s21, 4  ;;  %s240_s22 = int_to_ptr.vmem [resolvable:$true] %s239_s22 }
  0x14   : > { %s33_s24 = sadd.s32 1, %s2970_s28  ;;  %s30_s25 = ssub.s32 %s2974_s29, %s3086_s23 }
  0x15   : > { %2756 = dma.hbm_to_vmem [thread:$0]  (!%p2754_p10), %s221_s12, 2048, %s223_s15, [#allocation7], %s3792_s19, %s3792_s19, %s3793_s20  }
  0x16   : > { %2759 = dma.hbm_to_vmem [thread:$0]  (!%p2754_p10), %s238_s18, 4096, %s240_s22, [#allocation7], %s3792_s19, %s3792_s19, %s3793_s20  }
  0x17   : > { %p40_p12 = scmp.ne.s32.totalorder %s2970_s28, %s2966_s27  ;;  %p31_p13 = scmp.eq.s32.totalorder %s30_s25, 0 }
  0x18   : > { %p41_p0 = scmp.eq.s32.totalorder %s2974_s29, 0  ;;  %p2770_p5 = scmp.lt.s32.totalorder %s2974_s29, 2 }
  0x19   : > { %p3096_p3 = por %p196_p2, %p40_p12  ;;  %s262_s11 = sand.u32 1, %s2970_s28  }
  0x1a   : > { %s3102_s10 = scalar_select %p31_p13, %s2970_s28, %s33_s24  }
  0x1b   : > { %p42_p7 = por %p41_p0, %p40_p12  ;;  %s2470_s12 = sshll.u32 %s262_s11, 8 }
  0x1c   : > { %s2674_s14 = sshll.u32 %s2974_s29, 8  ;;  %s266_s18 = scalar_lea.vmem [#allocation3], %s2470_s12 }
  0x1d   : > { %s271_s17 = scalar_lea.hbm %s3784_s0, %s2674_s14  ;;  %s274_s21 = sshll.u32 %s266_s18, 4  ;;  %s275_s21 = int_to_ptr.vmem [resolvable:$true] %s274_s21 }
  0x1e   : > { %s272_s22 = sshll.u32 %s271_s17, 4  ;;  %p3109_p2 = pnand %p2770_p5, %p42_p7  ;;  %s273_s22 = int_to_ptr.hbm [resolvable:$true] %s272_s22 }
  0x1f   : > { %s263_s24 = scalar_lea.sflag [#allocation4], %s262_s11  ;;  %s2874_s19 = sshra.s32 %s273_s22, 4  ;;  %s2875_s19 = int_to_ptr.hbm [resolvable:$true] %s2874_s19 }
  0x20   : > { %s2876_s20 = scalar_lea.hbm %s2875_s19, 256  ;;  %p2878_p10 = pneg %p3109_p2 }
  0x21   : > { %p2877_p9 = scmp.ne.s32.totalorder %s2875_s19, %s2876_s20  ;;  %s2881_s15 = scalar_lea.hbm %s3784_s0, 512 }
  0x22   : > { %p2882_p0 = scmp.lt.s32.totalorder %s2875_s19, %s3784_s0  ;;  %p2883_p5 = scmp.lt.s32.totalorder %s2881_s15, %s2876_s20 }
  0x23   : > { %p2879_p12 = pnand %p2878_p10, %p2877_p9 }
  0x24   : > { %p2884_p7 = por %p2883_p5, %p2882_p0 }
  0x25   : > { %p2880_p13 = pneg %p2879_p12 }
  0x27   : > { %p2885_p11 = pnand %p2884_p7, %p2880_p13 }
  0x29   : > { %2888 = shalt.err (!%p2885_p11)
}
  0x2a   : > { %s3799_s11 = smov 8   ;;  %s3800_s18 = smov 128  }
  0x2b   : > { %2763 = dma.hbm_to_vmem [thread:$0]  (!%p3109_p2), %s273_s22, 4096, %s275_s21, %s263_s24, %s3800_s18, %s3800_s18, %s3799_s11  }
  0x2c   : > { %286 = sbr.rel (%p3067_p8) target bundleno = 1102 (0x44e), region = 48  ;;  %s3129_s14 = sand.u32 (!%p3067_p8), 1, %s2966_s27  }
  0x2d   : > { %s2474_s19 = sshll.u32 (!%p3067_p8), %s3129_s14, 8  ;;  %s289_s20 = scalar_lea.sflag (!%p3067_p8), [#allocation4], %s3129_s14 }
  0x2e   : > { %s3133_s12 = scalar_lea.vmem (!%p3067_p8), [#allocation3], %s2474_s19 }
  0x31   : > { %2949 = dma.done.wait (%p3054_p4), %s289_s20, 4096  }
  0x32   : > { %2951 = vsyncadd (%p3054_p4), %s289_s20, 4294963200 }
  0x33   : > { %2953 = dma.done.wait (%p47_p1), [#allocation7], 6144  }
  0x34   : > { %2955 = vsyncadd (%p47_p1), [#allocation7], 4294961152  ;;  %v2536_v1 = vld [vmem:[#allocation6 + $0x70] sm:$0xf]  ;;  %v2690_v2 = vld [vmem:[#allocation6 + $0x74] sm:$0xf0] }
  0x35   : > { %v2689_v3 = vld [vmem:[#allocation6 + $0x74] sm:$0xf]  ;;  %v2537_v4 = vor.u32 %v2690_v2, %v2536_v1  ;;  %v2538_v5 = vld [vmem:[#allocation6 + $0x78] sm:$0xf0]  ;;  %v2528_v6 = vld [vmem:[#allocation6 + $0x60] sm:$0xf] }
  0x36   : > { %v2688_v7 = vld [vmem:[#allocation6 + $0x64] sm:$0xf0]  ;;  %v2541_v8 = vor.u32 %v2689_v3, %v2538_v5  ;;  %v2687_v9 = vld [vmem:[#allocation6 + $0x64] sm:$0xf]  ;;  %v2530_v10 = vld [vmem:[#allocation6 + $0x68] sm:$0xf0] }
  0x37   : > { %485 = vmatpush.bf16.msra.mxu0 %v2537_v4  ;;  %2723 = vmatpush.bf16.msra.mxu2 %v2537_v4  ;;  %v2529_v11 = vor.u32 %v2688_v7, %v2528_v6  ;;  %v2533_v12 = vor.u32 %v2687_v9, %v2530_v10  ;;  %v2520_v13 = vld [vmem:[#allocation6 + $0x50] sm:$0xf]  ;;  %v2686_v14 = vld [vmem:[#allocation6 + $0x54] sm:$0xf0]  ;;  %v2685_v15 = vld [vmem:[#allocation6 + $0x54] sm:$0xf] }
  0x38   : > { %574 = vmatpush.bf16.msra.mxu1 %v2541_v8  ;;  %2731 = vmatpush.bf16.msra.mxu3 %v2541_v8  ;;  %v2522_v16 = vld [vmem:[#allocation6 + $0x58] sm:$0xf0]  ;;  %v2521_v17 = vor.u32 %v2686_v14, %v2520_v13  ;;  %v2512_v19 = vld [vmem:[#allocation6 + $0x40] sm:$0xf]  ;;  %v2684_v20 = vld [vmem:[#allocation6 + $0x44] sm:$0xf0] }
  0x39   : > { %v2525_v18 = vor.u32 %v2685_v15, %v2522_v16  ;;  %v2683_v21 = vld [vmem:[#allocation6 + $0x44] sm:$0xf]  ;;  %v2514_v22 = vld [vmem:[#allocation6 + $0x48] sm:$0xf0]  ;;  %v2513_v23 = vor.u32 %v2684_v20, %v2512_v19  ;;  %v2504_v25 = vld [vmem:[#allocation6 + $0x30] sm:$0xf] }
  0x3a   : > { %v2517_v24 = vor.u32 %v2683_v21, %v2514_v22  ;;  %v2682_v26 = vld [vmem:[#allocation6 + $0x34] sm:$0xf0]  ;;  %v2681_v27 = vld [vmem:[#allocation6 + $0x34] sm:$0xf]  ;;  %v2506_v28 = vld [vmem:[#allocation6 + $0x38] sm:$0xf0] }
  0x3b   : > { %486 = vmatpush.bf16.msra.mxu0 %v2529_v11  ;;  %2724 = vmatpush.bf16.msra.mxu2 %v2529_v11  ;;  %v2505_v29 = vor.u32 %v2682_v26, %v2504_v25  ;;  %v2509_v30 = vor.u32 %v2681_v27, %v2506_v28  ;;  %v2496_v31 = vld [vmem:[#allocation6 + $0x20] sm:$0xf]  ;;  %v2680_v32 = vld [vmem:[#allocation6 + $0x24] sm:$0xf0]  ;;  %v2679_v33 = vld [vmem:[#allocation6 + $0x24] sm:$0xf] }
  0x3c   : > { %575 = vmatpush.bf16.msra.mxu1 %v2533_v12  ;;  %2732 = vmatpush.bf16.msra.mxu3 %v2533_v12  ;;  %v2498_v34 = vld [vmem:[#allocation6 + $0x28] sm:$0xf0]  ;;  %v2497_v35 = vor.u32 %v2680_v32, %v2496_v31  ;;  %v2488_v37 = vld [vmem:[#allocation6 + $0x10] sm:$0xf]  ;;  %v2678_v38 = vld [vmem:[#allocation6 + $0x14] sm:$0xf0] }
  0x3d   : > { %v2501_v36 = vor.u32 %v2679_v33, %v2498_v34  ;;  %v2677_v39 = vld [vmem:[#allocation6 + $0x14] sm:$0xf]  ;;  %v2490_v40 = vld [vmem:[#allocation6 + $0x18] sm:$0xf0]  ;;  %v2489_v41 = vor.u32 %v2678_v38, %v2488_v37  ;;  %v2480_v43 = vld [vmem:[#allocation6] sm:$0xf] }
  0x3e   : > { %v2493_v42 = vor.u32 %v2677_v39, %v2490_v40  ;;  %v2676_v44 = vld [vmem:[#allocation6 + $0x4] sm:$0xf0]  ;;  %v2675_v45 = vld [vmem:[#allocation6 + $0x4] sm:$0xf]  ;;  %v2482_v46 = vld [vmem:[#allocation6 + $0x8] sm:$0xf0] }
  0x3f   : > { %487 = vmatpush.bf16.msra.mxu0 %v2521_v17  ;;  %2725 = vmatpush.bf16.msra.mxu2 %v2521_v17  ;;  %v335_v47 = vld [vmem:[%s3133_s12] sm:$0xff]  ;;  %v2600_v48 = vld [vmem:[#allocation8 + $0x70] sm:$0xf]  ;;  %v2706_v49 = vld [vmem:[#allocation8 + $0x74] sm:$0xf0]  ;;  %v2481_v52 = vor.u32 %v2676_v44, %v2480_v43  ;;  %v2485_v56 = vor.u32 %v2675_v45, %v2482_v46  ;;  %vm2262_vm0 = vcmask 130112  }
  0x40   : > { %576 = vmatpush.bf16.msra.mxu1 %v2525_v18  ;;  %2733 = vmatpush.bf16.msra.mxu3 %v2525_v18  ;;  %v2664_v50 = vld [vmem:[#allocation8 + $0xf0] sm:$0xf]  ;;  %v2722_v51 = vld [vmem:[#allocation8 + $0xf4] sm:$0xf0]  ;;  %v336_v53 = vld [vmem:[%s3133_s12 + $0x8] sm:$0xff]  ;;  %v2601_v59 = vor.u32 %v2706_v49, %v2600_v48  ;;  %vm2266_vm1 = vcmask 195712  }
  0x41   : > { %v351_v54 = vld [vmem:[%s3133_s12 + $0x80] sm:$0xff]  ;;  %v352_v55 = vld [vmem:[%s3133_s12 + $0x88] sm:$0xff]  ;;  %v2705_v57 = vld [vmem:[#allocation8 + $0x74] sm:$0xf]  ;;  %v2665_v60 = vor.u32 %v2722_v51, %v2664_v50  ;;  %v367_v0 = vpack.c.bf16 %v336_v53, %v335_v47  ;;  %vm2270_vm2 = vcmask 261312   ;;  %vm2274_vm3 = vcmask 326912  }
  0x42   : > { %v2602_v58 = vld [vmem:[#allocation8 + $0x78] sm:$0xf0]  ;;  %v2721_v61 = vld [vmem:[#allocation8 + $0xf4] sm:$0xf]  ;;  %v2592_v63 = vld [vmem:[#allocation8 + $0x60] sm:$0xf]  ;;  %v375_v1 = vpack.c.bf16 %v352_v55, %v351_v54 }
  0x43   : > { %488 = vmatpush.bf16.msra.mxu0 %v2513_v23  ;;  %2726 = vmatpush.bf16.msra.mxu2 %v2513_v23  ;;  %v2666_v62 = vld [vmem:[#allocation8 + $0xf8] sm:$0xf0]  ;;  %v2704_v2 = vld [vmem:[#allocation8 + $0x64] sm:$0xf0]  ;;  %v2656_v3 = vld [vmem:[#allocation8 + $0xe0] sm:$0xf]  ;;  %v2605_v5 = vor.u32 %v2705_v57, %v2602_v58 }
  0x44   : > { %577 = vmatpush.bf16.msra.mxu1 %v2517_v24  ;;  %2734 = vmatpush.bf16.msra.mxu3 %v2517_v24  ;;  %v2720_v4 = vld [vmem:[#allocation8 + $0xe4] sm:$0xf0]  ;;  %v2669_v6 = vor.u32 %v2721_v61, %v2666_v62  ;;  %v2593_v7 = vor.u32 %v2704_v2, %v2592_v63  ;;  %v2703_v9 = vld [vmem:[#allocation8 + $0x64] sm:$0xf]  ;;  %v2594_v10 = vld [vmem:[#allocation8 + $0x68] sm:$0xf0] }
  0x45   : > { %v2657_v8 = vor.u32 %v2720_v4, %v2656_v3  ;;  %v2597_v11 = vor.u32 %v2703_v9, %v2594_v10  ;;  %v2719_v12 = vld [vmem:[#allocation8 + $0xe4] sm:$0xf]  ;;  %v2658_v13 = vld [vmem:[#allocation8 + $0xe8] sm:$0xf0]  ;;  %v2584_v15 = vld [vmem:[#allocation8 + $0x50] sm:$0xf] }
  0x46   : > { %v2661_v14 = vor.u32 %v2719_v12, %v2658_v13  ;;  %v2702_v16 = vld [vmem:[#allocation8 + $0x54] sm:$0xf0]  ;;  %v2648_v17 = vld [vmem:[#allocation8 + $0xd0] sm:$0xf]  ;;  %v2701_v27 = vld [vmem:[#allocation8 + $0x54] sm:$0xf] }
  0x47   : > { %489 = vmatpush.bf16.msra.mxu0 %v2505_v29  ;;  %2727 = vmatpush.bf16.msra.mxu2 %v2505_v29  ;;  %v2585_v18 = vor.u32 %v2702_v16, %v2584_v15  ;;  %v2718_v19 = vld [vmem:[#allocation8 + $0xd4] sm:$0xf0]  ;;  %v337_v21 = vld [vmem:[%s3133_s12 + $0x10] sm:$0xff]  ;;  %v2586_v28 = vld [vmem:[#allocation8 + $0x58] sm:$0xf0]  ;;  %vm2278_vm4 = vcmask 392512  }
  0x48   : > { %578 = vmatpush.bf16.msra.mxu1 %v2509_v30  ;;  %2735 = vmatpush.bf16.msra.mxu3 %v2509_v30  ;;  %v2649_v20 = vor.u32 %v2718_v19, %v2648_v17  ;;  %v338_v22 = vld [vmem:[%s3133_s12 + $0x18] sm:$0xff]  ;;  %v353_v23 = vld [vmem:[%s3133_s12 + $0x90] sm:$0xff]  ;;  %v2589_v29 = vor.u32 %v2701_v27, %v2586_v28  ;;  %v2576_v33 = vld [vmem:[#allocation8 + $0x40] sm:$0xf]  ;;  %vm2282_vm5 = vcmask 458112   ;;  %vm2286_vm6 = vcmask 523712  }
  0x49   : > { %v354_v24 = vld [vmem:[%s3133_s12 + $0x98] sm:$0xff]  ;;  %v368_v25 = vpack.c.bf16 %v338_v22, %v337_v21  ;;  %v2717_v30 = vld [vmem:[#allocation8 + $0xd4] sm:$0xf]  ;;  %v2700_v34 = vld [vmem:[#allocation8 + $0x44] sm:$0xf0]  ;;  %vm2290_vm7 = vcmask 589312  }
  0x4a   : > { %v376_v26 = vpack.c.bf16 %v354_v24, %v353_v23  ;;  %v2650_v31 = vld [vmem:[#allocation8 + $0xd8] sm:$0xf0]  ;;  %v2716_v37 = vld [vmem:[#allocation8 + $0xc4] sm:$0xf0]  ;;  %v339_v39 = vld [vmem:[%s3133_s12 + $0x20] sm:$0xff]  ;;  %vm2294_vm8 = vcmask 654912  }
  0x4b   : > { %490 = vmatpush.bf16.msra.mxu0 %v2497_v35  ;;  %2728 = vmatpush.bf16.msra.mxu2 %v2497_v35  ;;  %v2653_v32 = vor.u32 %v2717_v30, %v2650_v31  ;;  %v2640_v35 = vld [vmem:[#allocation8 + $0xc0] sm:$0xf]  ;;  %v340_v40 = vld [vmem:[%s3133_s12 + $0x28] sm:$0xff]  ;;  %v2699_v45 = vld [vmem:[#allocation8 + $0x44] sm:$0xf]  ;;  %vm2298_vm9 = vcmask 720512  }
  0x4c   : > { %579 = vmatpush.bf16.msra.mxu1 %v2501_v36  ;;  %2736 = vmatpush.bf16.msra.mxu3 %v2501_v36  ;;  %v2577_v36 = vor.u32 %v2700_v34, %v2576_v33  ;;  %v2641_v38 = vor.u32 %v2716_v37, %v2640_v35  ;;  %v369_v43 = vpack.c.bf16 %v340_v40, %v339_v39  ;;  %v2578_v46 = vld [vmem:[#allocation8 + $0x48] sm:$0xf0]  ;;  %v2715_v48 = vld [vmem:[#allocation8 + $0xc4] sm:$0xf]  ;;  %v2568_v51 = vld [vmem:[#allocation8 + $0x30] sm:$0xf] }
  0x4d   : > { %v2581_v47 = vor.u32 %v2699_v45, %v2578_v46  ;;  %v2642_v49 = vld [vmem:[#allocation8 + $0xc8] sm:$0xf0]  ;;  %v2632_v53 = vld [vmem:[#allocation8 + $0xb0] sm:$0xf]  ;;  %v2714_v55 = vld [vmem:[#allocation8 + $0xb4] sm:$0xf0] }
  0x4e   : > { %v2645_v50 = vor.u32 %v2715_v48, %v2642_v49  ;;  %v341_v57 = vld [vmem:[%s3133_s12 + $0x30] sm:$0xff]  ;;  %v342_v58 = vld [vmem:[%s3133_s12 + $0x38] sm:$0xff]  ;;  %v2712_v9 = vld [vmem:[#allocation8 + $0xa4] sm:$0xf0]  ;;  %vm2302_vm10 = vcmask 786112   ;;  %vm2306_vm11 = vcmask 851712  }
  0x4f   : > { %491 = vmatpush.bf16.msra.mxu0 %v2489_v41  ;;  %2729 = vmatpush.bf16.msra.mxu2 %v2489_v41  ;;  %v355_v41 = vld [vmem:[%s3133_s12 + $0xa0] sm:$0xff]  ;;  %v370_v61 = vpack.c.bf16 %v342_v58, %v341_v57  ;;  %v2697_v63 = vld [vmem:[#allocation8 + $0x34] sm:$0xf]  ;;  %v2634_v3 = vld [vmem:[#allocation8 + $0xb8] sm:$0xf0]  ;;  %vm2310_vm12 = vcmask 917312  }
  0x50   : > { %580 = vmatpush.bf16.msra.mxu1 %v2493_v42  ;;  %2737 = vmatpush.bf16.msra.mxu3 %v2493_v42  ;;  %v356_v42 = vld [vmem:[%s3133_s12 + $0xa8] sm:$0xff]  ;;  %v2713_v2 = vld [vmem:[#allocation8 + $0xb4] sm:$0xf]  ;;  %v359_v13 = vld [vmem:[%s3133_s12 + $0xc0] sm:$0xff]  ;;  %s2477_s16 = sshll.u32 %s3129_s14, 1  ;;  %s2671_s17 = sshll.u32 %s3045_s6, 1 }
  0x51   : > { %v377_v44 = vpack.c.bf16 %v356_v42, %v355_v41  ;;  %v2637_v4 = vor.u32 %v2713_v2, %v2634_v3  ;;  %v344_v12 = vld [vmem:[%s3133_s12 + $0x48] sm:$0xff]  ;;  %v2695_v17 = vld [vmem:[#allocation8 + $0x24] sm:$0xf]  ;;  %v2552_v23 = vld [vmem:[#allocation8 + $0x10] sm:$0xf]  ;;  %s2371_s19 = scalar_lea.hbm %s3791_s7, %s2671_s17  ;;  %vm2314_vm13 = vcmask 982912  }
  0x52   : > { %v2626_v21 = vld [vmem:[#allocation8 + $0xa8] sm:$0xf0]  ;;  %v2694_v24 = vld [vmem:[#allocation8 + $0x14] sm:$0xf0]  ;;  %v361_v31 = vld [vmem:[%s3133_s12 + $0xd0] sm:$0xff]  ;;  %vm2318_vm14 = vcmask 1048512  }
  0x53   : > { %492 = vmatpush.bf16.msra.mxu0 %v2481_v52  ;;  %2730 = vmatpush.bf16.msra.mxu2 %v2481_v52  ;;  %v2698_v52 = vld [vmem:[#allocation8 + $0x34] sm:$0xf0]  ;;  %v2693_v35 = vld [vmem:[#allocation8 + $0x14] sm:$0xf]  ;;  %v2618_v39 = vld [vmem:[#allocation8 + $0x98] sm:$0xf0] }
  0x54   : > { %581 = vmatpush.bf16.msra.mxu1 %v2485_v56  ;;  %2738 = vmatpush.bf16.msra.mxu3 %v2485_v56  ;;  %v2569_v54 = vor.u32 %v2698_v52, %v2568_v51  ;;  %v2633_v56 = vor.u32 %v2714_v55, %v2632_v53  ;;  %v2710_v27 = vld [vmem:[#allocation8 + $0x94] sm:$0xf0]  ;;  %v2544_v41 = vld [vmem:[#allocation8] sm:$0xf]  ;;  %v2692_v42 = vld [vmem:[#allocation8 + $0x4] sm:$0xf0] }
  0x55   : > { %v346_v30 = vld [vmem:[%s3133_s12 + $0x58] sm:$0xff]  ;;  %v348_v45 = vld [vmem:[%s3133_s12 + $0x68] sm:$0xff]  ;;  %v363_v46 = vld [vmem:[%s3133_s12 + $0xe0] sm:$0xff]  ;;  %s333_s6 = scalar_lea.vmem [#allocation9], %s2477_s16  ;;  %vm2352_vm15 = vcmask 1040384   ;;  %s2361_s8 = scalar_lea.sflag [#allocation5], %s3129_s14 }
  0x56   : > { %493 = vmatmul.bf16.vlgmr.msra.gmra.mxu0 %v367_v0  ;;  %533 = vmatmul.bf16.vlgmr.msra.gmra.mxu2 %v375_v1  ;;  %v2708_v51 = vld [vmem:[#allocation8 + $0x84] sm:$0xf0]  ;;  %v2691_v52 = vld [vmem:[#allocation8 + $0x4] sm:$0xf]  ;;  %s2373_s20 = sshll.u32 %s333_s6, 4  ;;  %s2924_s24 = scalar_lea.hbm %s3791_s7, 4  ;;  %s2374_s20 = int_to_ptr.vmem [resolvable:$true] %s2373_s20 }
  0x57   : > { %957 = vmatpush.bf16.msrb.mxu2 %v2601_v59  ;;  %582 = vmatmul.bf16.vlgmr.msra.gmra.mxu1 %v367_v0  ;;  %v357_v59 = vld [vmem:[%s3133_s12 + $0xb0] sm:$0xff]  ;;  %v2570_v0 = vld [vmem:[#allocation8 + $0x38] sm:$0xf0]  ;;  %v2707_v55 = vld [vmem:[#allocation8 + $0x84] sm:$0xf] }
  0x58   : > { %1046 = vmatpush.bf16.msrb.mxu3 %v2665_v60  ;;  %1135 = vmatpush.bf16.msrb.mxu0 %v2605_v5  ;;  %v358_v60 = vld [vmem:[%s3133_s12 + $0xb8] sm:$0xff]  ;;  %v2560_v5 = vld [vmem:[#allocation8 + $0x20] sm:$0xf] }
  0x59   : > { %622 = vmatmul.bf16.vlgmr.msra.gmra.mxu3 %v375_v1  ;;  %1224 = vmatpush.bf16.msrb.mxu1 %v2669_v6  ;;  %v378_v62 = vpack.c.bf16 %v358_v60, %v357_v59  ;;  %v2573_v1 = vor.u32 %v2697_v63, %v2570_v0  ;;  %v2696_v6 = vld [vmem:[#allocation8 + $0x24] sm:$0xf0]  ;;  %v349_v59 = vld [vmem:[%s3133_s12 + $0x70] sm:$0xff]  ;;  %v350_v60 = vld [vmem:[%s3133_s12 + $0x78] sm:$0xff] }
  0x5a   : > { %v374_v63 = vpack.c.bf16 %v350_v60, %v349_v59 }
  0x5b   : > { %958 = vmatpush.bf16.msrb.mxu2 %v2593_v7  ;;  %v2624_v7 = vld [vmem:[#allocation8 + $0xa0] sm:$0xf] }
  0x5c   : > { %1047 = vmatpush.bf16.msrb.mxu3 %v2657_v8  ;;  %1136 = vmatpush.bf16.msrb.mxu0 %v2597_v11  ;;  %v2561_v8 = vor.u32 %v2696_v6, %v2560_v5  ;;  %v2625_v10 = vor.u32 %v2712_v9, %v2624_v7  ;;  %v343_v11 = vld [vmem:[%s3133_s12 + $0x40] sm:$0xff] }
  0x5d   : > { %1225 = vmatpush.bf16.msrb.mxu1 %v2661_v14  ;;  %v360_v14 = vld [vmem:[%s3133_s12 + $0xc8] sm:$0xff]  ;;  %v371_v15 = vpack.c.bf16 %v344_v12, %v343_v11 }
  0x5e   : > { %v379_v16 = vpack.c.bf16 %v360_v14, %v359_v13 }
  0x5f   : > { %959 = vmatpush.bf16.msrb.mxu2 %v2585_v18  ;;  %v2562_v18 = vld [vmem:[#allocation8 + $0x28] sm:$0xf0] }
  0x60   : > { %1048 = vmatpush.bf16.msrb.mxu3 %v2649_v20  ;;  %1137 = vmatpush.bf16.msrb.mxu0 %v2589_v29  ;;  %v2565_v19 = vor.u32 %v2695_v17, %v2562_v18  ;;  %v2711_v20 = vld [vmem:[#allocation8 + $0xa4] sm:$0xf]  ;;  %v345_v29 = vld [vmem:[%s3133_s12 + $0x50] sm:$0xff] }
  0x61   : > { %1226 = vmatpush.bf16.msrb.mxu1 %v2653_v32  ;;  %v2629_v22 = vor.u32 %v2711_v20, %v2626_v21  ;;  %v362_v32 = vld [vmem:[%s3133_s12 + $0xd8] sm:$0xff]  ;;  %v372_v33 = vpack.c.bf16 %v346_v30, %v345_v29 }
  0x62   : > { %v380_v34 = vpack.c.bf16 %v362_v32, %v361_v31 }
  0x63   : > { %960 = vmatpush.bf16.msrb.mxu2 %v2577_v36  ;;  %v2554_v36 = vld [vmem:[#allocation8 + $0x18] sm:$0xf0] }
  0x64   : > { %1049 = vmatpush.bf16.msrb.mxu3 %v2641_v38  ;;  %1138 = vmatpush.bf16.msrb.mxu0 %v2581_v47  ;;  %v2557_v37 = vor.u32 %v2693_v35, %v2554_v36  ;;  %v2709_v38 = vld [vmem:[#allocation8 + $0x94] sm:$0xf]  ;;  %v364_v47 = vld [vmem:[%s3133_s12 + $0xe8] sm:$0xff] }
  0x65   : > { %1227 = vmatpush.bf16.msrb.mxu1 %v2645_v50  ;;  %v2621_v40 = vor.u32 %v2709_v38, %v2618_v39  ;;  %v381_v49 = vpack.c.bf16 %v364_v47, %v363_v46  ;;  %v2608_v50 = vld [vmem:[#allocation8 + $0x80] sm:$0xf] }
  0x66   : > { %498 = vmatmul.bf16.gmra.mxu0 %v368_v25  ;;  %538 = vmatmul.bf16.gmra.mxu2 %v376_v26  ;;  %v2609_v53 = vor.u32 %v2708_v51, %v2608_v50 }
  0x67   : > { %587 = vmatmul.bf16.gmra.mxu1 %v368_v25  ;;  %961 = vmatpush.bf16.msrb.mxu2 %v2569_v54  ;;  %v2616_v25 = vld [vmem:[#allocation8 + $0x90] sm:$0xf]  ;;  %v2546_v54 = vld [vmem:[#allocation8 + $0x8] sm:$0xf0] }
  0x68   : > { %1050 = vmatpush.bf16.msrb.mxu3 %v2633_v56  ;;  %1139 = vmatpush.bf16.msrb.mxu0 %v2573_v1  ;;  %v2617_v28 = vor.u32 %v2710_v27, %v2616_v25  ;;  %v2610_v56 = vld [vmem:[#allocation8 + $0x88] sm:$0xf0]  ;;  %v2549_v57 = vor.u32 %v2691_v52, %v2546_v54  ;;  %v399_v1 = vld [vmem:[%s3786_s2] sm:$0x3] }
  0x69   : > { %627 = vmatmul.bf16.gmra.mxu3 %v376_v26  ;;  %1228 = vmatpush.bf16.msrb.mxu1 %v2637_v4  ;;  %v2553_v26 = vor.u32 %v2694_v24, %v2552_v23  ;;  %v2613_v58 = vor.u32 %v2707_v55, %v2610_v56  ;;  %v3178_v4 = vperm.slane %v399_v1, 0  ;;  %v3180_v5 = vperm.slane %v399_v1, 1 }
  0x6b   : > { %962 = vmatpush.bf16.msrb.mxu2 %v2561_v8 }
  0x6c   : > { %1051 = vmatpush.bf16.msrb.mxu3 %v2625_v10  ;;  %1140 = vmatpush.bf16.msrb.mxu0 %v2565_v19 }
  0x6d   : > { %1229 = vmatpush.bf16.msrb.mxu1 %v2629_v22 }
  0x6f   : > { %963 = vmatpush.bf16.msrb.mxu2 %v2553_v26 }
  0x70   : > { %1052 = vmatpush.bf16.msrb.mxu3 %v2617_v28  ;;  %1141 = vmatpush.bf16.msrb.mxu0 %v2557_v37 }
  0x71   : > { %1230 = vmatpush.bf16.msrb.mxu1 %v2621_v40 }
  0x74   : > { %1053 = vmatpush.bf16.msrb.mxu3 %v2609_v53  ;;  %1142 = vmatpush.bf16.msrb.mxu0 %v2549_v57 }
  0x75   : > { %1231 = vmatpush.bf16.msrb.mxu1 %v2613_v58 }
  0x76   : > { %503 = vmatmul.bf16.gmra.mxu0 %v369_v43  ;;  %543 = vmatmul.bf16.gmra.mxu2 %v377_v44 }
  0x77   : > { %592 = vmatmul.bf16.gmra.mxu1 %v369_v43  ;;  %v2545_v43 = vor.u32 %v2692_v42, %v2544_v41 }
  0x79   : > { %632 = vmatmul.bf16.gmra.mxu3 %v377_v44  ;;  %964 = vmatpush.bf16.msrb.mxu2 %v2545_v43  ;;  %v347_v44 = vld [vmem:[%s3133_s12 + $0x60] sm:$0xff] }
  0x7a   : > { %v373_v48 = vpack.c.bf16 %v348_v45, %v347_v44 }
  0x86   : > { %508 = vmatmul.bf16.gmra.mxu0 %v370_v61  ;;  %548 = vmatmul.bf16.gmra.mxu2 %v378_v62 }
  0x87   : > { %597 = vmatmul.bf16.gmra.mxu1 %v370_v61  ;;  %v365_v61 = vld [vmem:[%s3133_s12 + $0xf0] sm:$0xff] }
  0x89   : > { %637 = vmatmul.bf16.gmra.mxu3 %v378_v62  ;;  %v366_v62 = vld [vmem:[%s3133_s12 + $0xf8] sm:$0xff]  ;;  %s2375_s12 = sshll.u32 %s2371_s19, 4  ;;  %s2376_s12 = int_to_ptr.hbm [resolvable:$true] %s2375_s12 }
  0x8a   : > { %v382_v0 = vpack.c.bf16 %v366_v62, %v365_v61  ;;  %s2918_s13 = sshra.s32 %s2376_s12, 4  ;;  %s2919_s13 = int_to_ptr.hbm [resolvable:$true] %s2918_s13 }
  0x8b   : > { %s2920_s21 = scalar_lea.hbm %s2919_s13, 2  ;;  %p2925_p11 = scmp.lt.s32.totalorder %s2919_s13, %s3791_s7 }
  0x8c   : > { %p2921_p1 = scmp.ne.s32.totalorder %s2919_s13, %s2920_s21  ;;  %p2926_p2 = scmp.lt.s32.totalorder %s2924_s24, %s2920_s21 }
  0x8e   : > { %p2922_p4 = pnand %p2921_p1, %p3096_p3  ;;  %p2927_p9 = por %p2926_p2, %p2925_p11 }
  0x90   : > { %p2923_p8 = pneg %p2922_p4 }
  0x92   : > { %p2928_p10 = pnand %p2927_p9, %p2923_p8 }
  0x96   : > { %513 = vmatmul.bf16.gmra.mxu0 %v371_v15  ;;  %553 = vmatmul.bf16.gmra.mxu2 %v379_v16 }
  0x97   : > { %602 = vmatmul.bf16.gmra.mxu1 %v371_v15 }
  0x99   : > { %642 = vmatmul.bf16.gmra.mxu3 %v379_v16 }
  0xa6   : > { %518 = vmatmul.bf16.gmra.mxu0 %v372_v33  ;;  %558 = vmatmul.bf16.gmra.mxu2 %v380_v34 }
  0xa7   : > { %607 = vmatmul.bf16.gmra.mxu1 %v372_v33 }
  0xa9   : > { %647 = vmatmul.bf16.gmra.mxu3 %v380_v34 }
  0xb6   : > { %523 = vmatmul.bf16.gmra.mxu0 %v373_v48  ;;  %563 = vmatmul.bf16.gmra.mxu2 %v381_v49 }
  0xb7   : > { %612 = vmatmul.bf16.gmra.mxu1 %v373_v48 }
  0xb9   : > { %652 = vmatmul.bf16.gmra.mxu3 %v381_v49 }
  0xc6   : > { %528 = vmatmul.bf16.gmra.mxu0 %v374_v63  ;;  %568 = vmatmul.bf16.gmra.mxu2 %v382_v0 }
  0xc7   : > { %617 = vmatmul.bf16.gmra.mxu1 %v374_v63 }
  0xc9   : > { %657 = vmatmul.bf16.gmra.mxu3 %v382_v0 }
  0xd3   : > { %v494_v2 = vpop.f32.mrf.mxu0 }
  0xd4   : > { %v583_v3 = vpop.f32.mrf.mxu1  ;;  %v495_v7 = vadd.f32 %v494_v2, %v3178_v4 }
  0xd5   : > { %v584_v9 = vadd.f32 %v583_v3, %v3180_v5 }
  0xd6   : > { %v663_v14 = vmax.f32 %v495_v7, 0.0 }
  0xd7   : > { %v664_v17 = vmax.f32 %v584_v9, 0.0 }
  0xd9   : > { %v534_v6 = vpop.f32.mrf.mxu2 }
  0xda   : > { %v535_v16 = vadd.f32 %v534_v6, %v3178_v4 }
  0xdb   : > { %v496_v10 = vpop.f32.mrf.mxu0 }
  0xdc   : > { %v623_v8 = vpop.f32.mrf.mxu3  ;;  %v497_v11 = vadd.f32 %v496_v10, %v3178_v4  ;;  %v585_v12 = vpop.f32.mrf.mxu1  ;;  %v695_v23 = vmax.f32 %v535_v16, 0.0 }
  0xdd   : > { %v586_v13 = vadd.f32 %v585_v12, %v3180_v5  ;;  %v624_v19 = vadd.f32 %v623_v8, %v3180_v5 }
  0xde   : > { %v665_v15 = vmax.f32 %v497_v11, 0.0 }
  0xdf   : > { %v666_v18 = vmax.f32 %v586_v13, 0.0  ;;  %v696_v26 = vmax.f32 %v624_v19, 0.0 }
  0xe0   : > { %v727_v20 = vpack.c.bf16 %v665_v15, %v663_v14 }
  0xe1   : > { %v728_v21 = vpack.c.bf16 %v666_v18, %v664_v17  ;;  %v536_v22 = vpop.f32.mrf.mxu2 }
  0xe2   : > { %965 = vmatmul.bf16.vlgmr.msrb.gmra.mxu2 %v727_v20  ;;  %1143 = vmatmul.bf16.vlgmr.msrb.gmra.mxu0 %v727_v20  ;;  %v537_v24 = vadd.f32 %v536_v22, %v3178_v4 }
  0xe3   : > { %1054 = vmatmul.bf16.vlgmr.msrb.gmra.mxu3 %v728_v21  ;;  %1232 = vmatmul.bf16.vlgmr.msrb.gmra.mxu1 %v728_v21  ;;  %v499_v27 = vpop.f32.mrf.mxu0 }
  0xe4   : > { %v625_v25 = vpop.f32.mrf.mxu3  ;;  %v588_v29 = vpop.f32.mrf.mxu1  ;;  %v697_v30 = vmax.f32 %v537_v24, 0.0  ;;  %v500_v35 = vadd.f32 %v499_v27, %v3178_v4 }
  0xe5   : > { %v626_v28 = vadd.f32 %v625_v25, %v3180_v5  ;;  %v589_v37 = vadd.f32 %v588_v29, %v3180_v5 }
  0xe6   : > { %v3190_v32 = vpack.c.bf16 %v697_v30, %v695_v23  ;;  %v667_v42 = vmax.f32 %v500_v35, 0.0 }
  0xe7   : > { %v698_v31 = vmax.f32 %v626_v28, 0.0  ;;  %v668_v45 = vmax.f32 %v589_v37, 0.0 }
  0xe9   : > { %v3192_v33 = vpack.c.bf16 %v698_v31, %v696_v26  ;;  %v539_v34 = vpop.f32.mrf.mxu2 }
  0xea   : > { %v540_v44 = vadd.f32 %v539_v34, %v3178_v4 }
  0xeb   : > { %v501_v38 = vpop.f32.mrf.mxu0 }
  0xec   : > { %v628_v36 = vpop.f32.mrf.mxu3  ;;  %v502_v39 = vadd.f32 %v501_v38, %v3178_v4  ;;  %v590_v40 = vpop.f32.mrf.mxu1  ;;  %v699_v51 = vmax.f32 %v540_v44, 0.0 }
  0xed   : > { %v591_v41 = vadd.f32 %v590_v40, %v3180_v5  ;;  %v629_v47 = vadd.f32 %v628_v36, %v3180_v5 }
  0xee   : > { %v669_v43 = vmax.f32 %v502_v39, 0.0 }
  0xef   : > { %v670_v46 = vmax.f32 %v591_v41, 0.0  ;;  %v700_v54 = vmax.f32 %v629_v47, 0.0 }
  0xf0   : > { %v729_v48 = vpack.c.bf16 %v669_v43, %v667_v42 }
  0xf1   : > { %v730_v49 = vpack.c.bf16 %v670_v46, %v668_v45  ;;  %v541_v50 = vpop.f32.mrf.mxu2 }
  0xf2   : > { %970 = vmatmul.bf16.gmra.mxu2 %v729_v48  ;;  %1148 = vmatmul.bf16.gmra.mxu0 %v729_v48  ;;  %v542_v52 = vadd.f32 %v541_v50, %v3178_v4 }
  0xf3   : > { %1059 = vmatmul.bf16.gmra.mxu3 %v730_v49  ;;  %1237 = vmatmul.bf16.gmra.mxu1 %v730_v49  ;;  %v504_v55 = vpop.f32.mrf.mxu0 }
  0xf4   : > { %v630_v53 = vpop.f32.mrf.mxu3  ;;  %v593_v57 = vpop.f32.mrf.mxu1  ;;  %v701_v58 = vmax.f32 %v542_v52, 0.0  ;;  %v505_v63 = vadd.f32 %v504_v55, %v3178_v4 }
  0xf5   : > { %v631_v56 = vadd.f32 %v630_v53, %v3180_v5  ;;  %v594_v1 = vadd.f32 %v593_v57, %v3180_v5 }
  0xf6   : > { %v3202_v60 = vpack.c.bf16 %v701_v58, %v699_v51  ;;  %v671_v8 = vmax.f32 %v505_v63, 0.0 }
  0xf7   : > { %v702_v59 = vmax.f32 %v631_v56, 0.0  ;;  %v672_v11 = vmax.f32 %v594_v1, 0.0 }
  0xf9   : > { %v3204_v61 = vpack.c.bf16 %v702_v59, %v700_v54  ;;  %v544_v62 = vpop.f32.mrf.mxu2 }
  0xfa   : > { %v545_v10 = vadd.f32 %v544_v62, %v3178_v4 }
  0xfb   : > { %v506_v2 = vpop.f32.mrf.mxu0 }
  0xfc   : > { %v633_v0 = vpop.f32.mrf.mxu3  ;;  %v507_v3 = vadd.f32 %v506_v2, %v3178_v4  ;;  %v595_v6 = vpop.f32.mrf.mxu1  ;;  %v703_v17 = vmax.f32 %v545_v10, 0.0 }
  0xfd   : > { %v596_v7 = vadd.f32 %v595_v6, %v3180_v5  ;;  %v634_v13 = vadd.f32 %v633_v0, %v3180_v5 }
  0xfe   : > { %v673_v9 = vmax.f32 %v507_v3, 0.0 }
  0xff   : > { %v674_v12 = vmax.f32 %v596_v7, 0.0  ;;  %v704_v20 = vmax.f32 %v634_v13, 0.0 }
 0x100   : > { %v731_v14 = vpack.c.bf16 %v673_v9, %v671_v8 }
 0x101   : > { %v732_v15 = vpack.c.bf16 %v674_v12, %v672_v11  ;;  %v546_v16 = vpop.f32.mrf.mxu2 }
 0x102   : > { %975 = vmatmul.bf16.gmra.mxu2 %v731_v14  ;;  %1153 = vmatmul.bf16.gmra.mxu0 %v731_v14  ;;  %v547_v18 = vadd.f32 %v546_v16, %v3178_v4 }
 0x103   : > { %1064 = vmatmul.bf16.gmra.mxu3 %v732_v15  ;;  %1242 = vmatmul.bf16.gmra.mxu1 %v732_v15  ;;  %v509_v21 = vpop.f32.mrf.mxu0 }
 0x104   : > { %v635_v19 = vpop.f32.mrf.mxu3  ;;  %v598_v23 = vpop.f32.mrf.mxu1  ;;  %v705_v24 = vmax.f32 %v547_v18, 0.0  ;;  %v510_v29 = vadd.f32 %v509_v21, %v3178_v4 }
 0x105   : > { %v636_v22 = vadd.f32 %v635_v19, %v3180_v5  ;;  %v599_v31 = vadd.f32 %v598_v23, %v3180_v5 }
 0x106   : > { %v3214_v26 = vpack.c.bf16 %v705_v24, %v703_v17  ;;  %v675_v38 = vmax.f32 %v510_v29, 0.0 }
 0x107   : > { %v706_v25 = vmax.f32 %v636_v22, 0.0  ;;  %v676_v41 = vmax.f32 %v599_v31, 0.0 }
 0x109   : > { %v3216_v27 = vpack.c.bf16 %v706_v25, %v704_v20  ;;  %v549_v28 = vpop.f32.mrf.mxu2 }
 0x10a   : > { %v550_v40 = vadd.f32 %v549_v28, %v3178_v4 }
 0x10b   : > { %v511_v34 = vpop.f32.mrf.mxu0 }
 0x10c   : > { %v638_v30 = vpop.f32.mrf.mxu3  ;;  %v512_v35 = vadd.f32 %v511_v34, %v3178_v4  ;;  %v600_v36 = vpop.f32.mrf.mxu1  ;;  %v707_v47 = vmax.f32 %v550_v40, 0.0 }
 0x10d   : > { %v601_v37 = vadd.f32 %v600_v36, %v3180_v5  ;;  %v639_v43 = vadd.f32 %v638_v30, %v3180_v5 }
 0x10e   : > { %v677_v39 = vmax.f32 %v512_v35, 0.0 }
 0x10f   : > { %v678_v42 = vmax.f32 %v601_v37, 0.0  ;;  %v708_v50 = vmax.f32 %v639_v43, 0.0 }
 0x110   : > { %v733_v44 = vpack.c.bf16 %v677_v39, %v675_v38 }
 0x111   : > { %v734_v45 = vpack.c.bf16 %v678_v42, %v676_v41  ;;  %v551_v46 = vpop.f32.mrf.mxu2 }
 0x112   : > { %980 = vmatmul.bf16.gmra.mxu2 %v733_v44  ;;  %1158 = vmatmul.bf16.gmra.mxu0 %v733_v44  ;;  %v552_v48 = vadd.f32 %v551_v46, %v3178_v4 }
 0x113   : > { %1069 = vmatmul.bf16.gmra.mxu3 %v734_v45  ;;  %1247 = vmatmul.bf16.gmra.mxu1 %v734_v45  ;;  %v514_v51 = vpop.f32.mrf.mxu0 }
 0x114   : > { %v640_v49 = vpop.f32.mrf.mxu3  ;;  %v603_v53 = vpop.f32.mrf.mxu1  ;;  %v709_v54 = vmax.f32 %v552_v48, 0.0  ;;  %v515_v59 = vadd.f32 %v514_v51, %v3178_v4 }
 0x115   : > { %v641_v52 = vadd.f32 %v640_v49, %v3180_v5  ;;  %v604_v63 = vadd.f32 %v603_v53, %v3180_v5 }
 0x116   : > { %v3226_v56 = vpack.c.bf16 %v709_v54, %v707_v47  ;;  %v679_v6 = vmax.f32 %v515_v59, 0.0 }
 0x117   : > { %v710_v55 = vmax.f32 %v641_v52, 0.0  ;;  %v680_v9 = vmax.f32 %v604_v63, 0.0 }
 0x119   : > { %v3228_v57 = vpack.c.bf16 %v710_v55, %v708_v50  ;;  %v554_v58 = vpop.f32.mrf.mxu2 }
 0x11a   : > { %v555_v8 = vadd.f32 %v554_v58, %v3178_v4 }
 0x11b   : > { %v516_v0 = vpop.f32.mrf.mxu0 }
 0x11c   : > { %v643_v62 = vpop.f32.mrf.mxu3  ;;  %v517_v1 = vadd.f32 %v516_v0, %v3178_v4  ;;  %v605_v2 = vpop.f32.mrf.mxu1  ;;  %v711_v15 = vmax.f32 %v555_v8, 0.0 }
 0x11d   : > { %v606_v3 = vadd.f32 %v605_v2, %v3180_v5  ;;  %v644_v11 = vadd.f32 %v643_v62, %v3180_v5 }
 0x11e   : > { %v681_v7 = vmax.f32 %v517_v1, 0.0 }
 0x11f   : > { %v682_v10 = vmax.f32 %v606_v3, 0.0  ;;  %v712_v18 = vmax.f32 %v644_v11, 0.0 }
 0x120   : > { %v735_v12 = vpack.c.bf16 %v681_v7, %v679_v6 }
 0x121   : > { %v736_v13 = vpack.c.bf16 %v682_v10, %v680_v9  ;;  %v556_v14 = vpop.f32.mrf.mxu2 }
 0x122   : > { %985 = vmatmul.bf16.gmra.mxu2 %v735_v12  ;;  %1163 = vmatmul.bf16.gmra.mxu0 %v735_v12  ;;  %v557_v16 = vadd.f32 %v556_v14, %v3178_v4 }
 0x123   : > { %1074 = vmatmul.bf16.gmra.mxu3 %v736_v13  ;;  %1252 = vmatmul.bf16.gmra.mxu1 %v736_v13  ;;  %v519_v19 = vpop.f32.mrf.mxu0 }
 0x124   : > { %v645_v17 = vpop.f32.mrf.mxu3  ;;  %v608_v21 = vpop.f32.mrf.mxu1  ;;  %v713_v22 = vmax.f32 %v557_v16, 0.0  ;;  %v520_v29 = vadd.f32 %v519_v19, %v3178_v4 }
 0x125   : > { %v646_v20 = vadd.f32 %v645_v17, %v3180_v5  ;;  %v609_v31 = vadd.f32 %v608_v21, %v3180_v5 }
 0x126   : > { %v3238_v24 = vpack.c.bf16 %v713_v22, %v711_v15  ;;  %v683_v38 = vmax.f32 %v520_v29, 0.0 }
 0x127   : > { %v714_v23 = vmax.f32 %v646_v20, 0.0  ;;  %v684_v41 = vmax.f32 %v609_v31, 0.0 }
 0x129   : > { %v3240_v25 = vpack.c.bf16 %v714_v23, %v712_v18  ;;  %v559_v28 = vpop.f32.mrf.mxu2 }
 0x12a   : > { %v560_v40 = vadd.f32 %v559_v28, %v3178_v4 }
 0x12b   : > { %v521_v34 = vpop.f32.mrf.mxu0 }
 0x12c   : > { %v648_v30 = vpop.f32.mrf.mxu3  ;;  %v522_v35 = vadd.f32 %v521_v34, %v3178_v4  ;;  %v610_v36 = vpop.f32.mrf.mxu1  ;;  %v715_v47 = vmax.f32 %v560_v40, 0.0 }
 0x12d   : > { %v611_v37 = vadd.f32 %v610_v36, %v3180_v5  ;;  %v649_v43 = vadd.f32 %v648_v30, %v3180_v5 }
 0x12e   : > { %v685_v39 = vmax.f32 %v522_v35, 0.0 }
 0x12f   : > { %v686_v42 = vmax.f32 %v611_v37, 0.0  ;;  %v716_v50 = vmax.f32 %v649_v43, 0.0 }
 0x130   : > { %v737_v44 = vpack.c.bf16 %v685_v39, %v683_v38 }
 0x131   : > { %v738_v45 = vpack.c.bf16 %v686_v42, %v684_v41  ;;  %v561_v46 = vpop.f32.mrf.mxu2 }
 0x132   : > { %990 = vmatmul.bf16.gmra.mxu2 %v737_v44  ;;  %1168 = vmatmul.bf16.gmra.mxu0 %v737_v44  ;;  %v562_v48 = vadd.f32 %v561_v46, %v3178_v4 }
 0x133   : > { %1079 = vmatmul.bf16.gmra.mxu3 %v738_v45  ;;  %1257 = vmatmul.bf16.gmra.mxu1 %v738_v45  ;;  %v524_v51 = vpop.f32.mrf.mxu0 }
 0x134   : > { %v650_v49 = vpop.f32.mrf.mxu3  ;;  %v613_v53 = vpop.f32.mrf.mxu1  ;;  %v717_v54 = vmax.f32 %v562_v48, 0.0  ;;  %v525_v63 = vadd.f32 %v524_v51, %v3178_v4 }
 0x135   : > { %v651_v52 = vadd.f32 %v650_v49, %v3180_v5  ;;  %v614_v1 = vadd.f32 %v613_v53, %v3180_v5 }
 0x136   : > { %v3250_v58 = vpack.c.bf16 %v717_v54, %v715_v47  ;;  %v687_v8 = vmax.f32 %v525_v63, 0.0 }
 0x137   : > { %v718_v55 = vmax.f32 %v651_v52, 0.0  ;;  %v688_v11 = vmax.f32 %v614_v1, 0.0 }
 0x139   : > { %v3252_v59 = vpack.c.bf16 %v718_v55, %v716_v50  ;;  %v564_v62 = vpop.f32.mrf.mxu2 }
 0x13a   : > { %v565_v10 = vadd.f32 %v564_v62, %v3178_v4 }
 0x13b   : > { %v526_v2 = vpop.f32.mrf.mxu0 }
 0x13c   : > { %v653_v0 = vpop.f32.mrf.mxu3  ;;  %v527_v3 = vadd.f32 %v526_v2, %v3178_v4  ;;  %v615_v6 = vpop.f32.mrf.mxu1  ;;  %v719_v17 = vmax.f32 %v565_v10, 0.0  ;;  %v791_v2 = vld [vmem:[%s3788_s4] sm:$0x3] }
 0x13d   : > { %v616_v7 = vadd.f32 %v615_v6, %v3180_v5  ;;  %v654_v13 = vadd.f32 %v653_v0, %v3180_v5 }
 0x13e   : > { %v689_v9 = vmax.f32 %v527_v3, 0.0  ;;  %v3281_v3 = vperm.slane %v791_v2, 1 }
 0x13f   : > { %v690_v12 = vmax.f32 %v616_v7, 0.0  ;;  %v720_v20 = vmax.f32 %v654_v13, 0.0 }
 0x140   : > { %v739_v14 = vpack.c.bf16 %v689_v9, %v687_v8  ;;  %v1377_v9 = vld [vmem:[%s3789_s5] sm:$0x3] }
 0x141   : > { %v740_v15 = vpack.c.bf16 %v690_v12, %v688_v11  ;;  %v566_v16 = vpop.f32.mrf.mxu2 }
 0x142   : > { %995 = vmatmul.bf16.gmra.mxu2 %v739_v14  ;;  %1173 = vmatmul.bf16.gmra.mxu0 %v739_v14  ;;  %v567_v18 = vadd.f32 %v566_v16, %v3178_v4  ;;  %v3294_v14 = vperm.slane %v1377_v9, 1 }
 0x143   : > { %1084 = vmatmul.bf16.gmra.mxu3 %v740_v15  ;;  %1262 = vmatmul.bf16.gmra.mxu1 %v740_v15  ;;  %v529_v21 = vpop.f32.mrf.mxu0 }
 0x144   : > { %v655_v19 = vpop.f32.mrf.mxu3  ;;  %v618_v23 = vpop.f32.mrf.mxu1  ;;  %v721_v28 = vmax.f32 %v567_v18, 0.0  ;;  %v530_v35 = vadd.f32 %v529_v21, %v3178_v4  ;;  %v3297_v18 = vperm.slane %v1377_v9, 0 }
 0x145   : > { %v656_v22 = vadd.f32 %v655_v19, %v3180_v5  ;;  %v619_v37 = vadd.f32 %v618_v23, %v3180_v5 }
 0x146   : > { %v3262_v30 = vpack.c.bf16 %v721_v28, %v719_v17  ;;  %v691_v42 = vmax.f32 %v530_v35, 0.0 }
 0x147   : > { %v722_v29 = vmax.f32 %v656_v22, 0.0  ;;  %v692_v45 = vmax.f32 %v619_v37, 0.0 }
 0x149   : > { %v3264_v31 = vpack.c.bf16 %v722_v29, %v720_v20  ;;  %v569_v34 = vpop.f32.mrf.mxu2 }
 0x14a   : > { %v570_v44 = vadd.f32 %v569_v34, %v3178_v4 }
 0x14b   : > { %v531_v38 = vpop.f32.mrf.mxu0 }
 0x14c   : > { %v658_v36 = vpop.f32.mrf.mxu3  ;;  %v532_v39 = vadd.f32 %v531_v38, %v3178_v4  ;;  %v620_v40 = vpop.f32.mrf.mxu1  ;;  %v723_v51 = vmax.f32 %v570_v44, 0.0 }
 0x14d   : > { %v621_v41 = vadd.f32 %v620_v40, %v3180_v5  ;;  %v659_v47 = vadd.f32 %v658_v36, %v3180_v5 }
 0x14e   : > { %v693_v43 = vmax.f32 %v532_v39, 0.0 }
 0x14f   : > { %v694_v46 = vmax.f32 %v621_v41, 0.0  ;;  %v724_v54 = vmax.f32 %v659_v47, 0.0 }
 0x150   : > { %v741_v48 = vpack.c.bf16 %v693_v43, %v691_v42 }
 0x151   : > { %v742_v49 = vpack.c.bf16 %v694_v46, %v692_v45  ;;  %v571_v50 = vpop.f32.mrf.mxu2 }
 0x152   : > { %1000 = vmatmul.bf16.gmra.mxu2 %v741_v48  ;;  %1178 = vmatmul.bf16.gmra.mxu0 %v741_v48  ;;  %v572_v52 = vadd.f32 %v571_v50, %v3178_v4 }
 0x153   : > { %1089 = vmatmul.bf16.gmra.mxu3 %v742_v49  ;;  %1267 = vmatmul.bf16.gmra.mxu1 %v742_v49 }
 0x154   : > { %v660_v53 = vpop.f32.mrf.mxu3  ;;  %v725_v62 = vmax.f32 %v572_v52, 0.0 }
 0x155   : > { %v661_v55 = vadd.f32 %v660_v53, %v3180_v5  ;;  %v3286_v5 = vperm.slane %v791_v2, 0 }
 0x156   : > { %v3274_v0 = vpack.c.bf16 %v725_v62, %v723_v51 }
 0x157   : > { %v726_v63 = vmax.f32 %v661_v55, 0.0 }
 0x159   : > { %v3276_v1 = vpack.c.bf16 %v726_v63, %v724_v54 }
 0x15f   : > { %v1144_v6 = vpop.f32.mrf.mxu0 }
 0x160   : > { %v1145_v4 = vadd.f32 %v1144_v6, %v3281_v3  ;;  %v1233_v7 = vpop.f32.mrf.mxu1 }
 0x162   : > { %1005 = vmatmul.bf16.gmra.mxu2 %v3190_v32  ;;  %1183 = vmatmul.bf16.gmra.mxu0 %v3190_v32  ;;  %v1234_v8 = vadd.f32 %v1233_v7, %v1145_v4 }
 0x163   : > { %1094 = vmatmul.bf16.gmra.mxu3 %v3192_v33  ;;  %1272 = vmatmul.bf16.gmra.mxu1 %v3192_v33 }
 0x164   : > { %v1314_v15 = vmax.f32 %v1234_v8, 0.0 }
 0x165   : > { %v966_v10 = vpop.f32.mrf.mxu2 }
 0x166   : > { %v967_v11 = vadd.f32 %v966_v10, %v3286_v5  ;;  %v1055_v12 = vpop.f32.mrf.mxu3  ;;  %v1384_v21 = vmul.f32 %v3294_v14, %v1314_v15 }
 0x167   : > { %v1146_v13 = vpop.f32.mrf.mxu0 }
 0x168   : > { %v1056_v32 = vadd.f32 %v1055_v12, %v967_v11  ;;  %v1147_v16 = vadd.f32 %v1146_v13, %v3281_v3  ;;  %v1235_v17 = vpop.f32.mrf.mxu1 }
 0x16a   : > { %v1313_v33 = vmax.f32 %v1056_v32, 0.0  ;;  %v1236_v19 = vadd.f32 %v1235_v17, %v1147_v16 }
 0x16c   : > { %v1383_v20 = vmul.f32 %v3297_v18, %v1313_v33  ;;  %v1316_v35 = vmax.f32 %v1236_v19, 0.0 }
 0x16d   : > { %v968_v22 = vpop.f32.mrf.mxu2 }
 0x16e   : > { %v969_v23 = vadd.f32 %v968_v22, %v3286_v5  ;;  %v1057_v28 = vpop.f32.mrf.mxu3  ;;  %v1447_v29 = vadd.f32 %v1384_v21, %v1383_v20  ;;  %v1386_v42 = vmul.f32 %v3294_v14, %v1316_v35 }
 0x16f   : > { %v1149_v34 = vpop.f32.mrf.mxu0 }
 0x170   : > { %v1058_v36 = vadd.f32 %v1057_v28, %v969_v23  ;;  %v1150_v37 = vadd.f32 %v1149_v34, %v3281_v3  ;;  %v1238_v38 = vpop.f32.mrf.mxu1  ;;  %1448 = vadd.xlane.f32.xlu0 %v1447_v29 }
 0x172   : > { %v1315_v39 = vmax.f32 %v1058_v36, 0.0  ;;  %1010 = vmatmul.bf16.gmra.mxu2 %v3202_v60  ;;  %1188 = vmatmul.bf16.gmra.mxu0 %v3202_v60  ;;  %v1239_v40 = vadd.f32 %v1238_v38, %v1150_v37 }
 0x173   : > { %1099 = vmatmul.bf16.gmra.mxu3 %v3204_v61  ;;  %1277 = vmatmul.bf16.gmra.mxu1 %v3204_v61 }
 0x174   : > { %v1385_v41 = vmul.f32 %v3297_v18, %v1315_v39  ;;  %v1318_v48 = vmax.f32 %v1239_v40, 0.0 }
 0x175   : > { %v971_v43 = vpop.f32.mrf.mxu2 }
 0x176   : > { %v972_v44 = vadd.f32 %v971_v43, %v3286_v5  ;;  %v1060_v45 = vpop.f32.mrf.mxu3  ;;  %v1450_v46 = vadd.f32 %v1386_v42, %v1385_v41  ;;  %v1388_v53 = vmul.f32 %v3294_v14, %v1318_v48  ;;  %v1543_v41 = vld [vmem:[#allocation2] sm:$0x1] }
 0x177   : > { %v1151_v47 = vpop.f32.mrf.mxu0  ;;  %2739 = vpush %v1543_v41 }
 0x178   : > { %v1061_v49 = vadd.f32 %v1060_v45, %v972_v44  ;;  %v1152_v50 = vadd.f32 %v1151_v47, %v3281_v3  ;;  %v1240_v60 = vpop.f32.mrf.mxu1  ;;  %1451 = vadd.xlane.f32.xlu0 %v1450_v46 }
 0x17a   : > { %v1317_v51 = vmax.f32 %v1061_v49, 0.0  ;;  %v1241_v52 = vadd.f32 %v1240_v60, %v1152_v50 }
 0x17c   : > { %v1387_v61 = vmul.f32 %v3297_v18, %v1317_v51  ;;  %v1320_v6 = vmax.f32 %v1241_v52, 0.0 }
 0x17d   : > { %v973_v54 = vpop.f32.mrf.mxu2 }
 0x17e   : > { %v974_v55 = vadd.f32 %v973_v54, %v3286_v5  ;;  %v1062_v62 = vpop.f32.mrf.mxu3  ;;  %v1453_v63 = vadd.f32 %v1388_v53, %v1387_v61  ;;  %v1390_v12 = vmul.f32 %v3294_v14, %v1320_v6 }
 0x17f   : > { %v1154_v2 = vpop.f32.mrf.mxu0 }
 0x180   : > { %v1063_v4 = vadd.f32 %v1062_v62, %v974_v55  ;;  %v1155_v7 = vadd.f32 %v1154_v2, %v3281_v3  ;;  %v1243_v8 = vpop.f32.mrf.mxu1  ;;  %1454 = vadd.xlane.f32.xlu1 %v1453_v63 }
 0x182   : > { %v1319_v9 = vmax.f32 %v1063_v4, 0.0  ;;  %1015 = vmatmul.bf16.gmra.mxu2 %v3214_v26  ;;  %1193 = vmatmul.bf16.gmra.mxu0 %v3214_v26  ;;  %v1244_v10 = vadd.f32 %v1243_v8, %v1155_v7 }
 0x183   : > { %1104 = vmatmul.bf16.gmra.mxu3 %v3216_v27  ;;  %1282 = vmatmul.bf16.gmra.mxu1 %v3216_v27 }
 0x184   : > { %v1389_v11 = vmul.f32 %v3297_v18, %v1319_v9  ;;  %v1322_v33 = vmax.f32 %v1244_v10, 0.0 }
 0x185   : > { %v976_v13 = vpop.f32.mrf.mxu2 }
 0x186   : > { %v977_v15 = vadd.f32 %v976_v13, %v3286_v5  ;;  %v1065_v32 = vpop.f32.mrf.mxu3  ;;  %v1456_v16 = vadd.f32 %v1390_v12, %v1389_v11  ;;  %v1392_v23 = vmul.f32 %v3294_v14, %v1322_v33 }
 0x187   : > { %v1156_v17 = vpop.f32.mrf.mxu0 }
 0x188   : > { %v1066_v19 = vadd.f32 %v1065_v32, %v977_v15  ;;  %v1157_v20 = vadd.f32 %v1156_v17, %v3281_v3  ;;  %v1245_v26 = vpop.f32.mrf.mxu1  ;;  %1457 = vadd.xlane.f32.xlu1 %v1456_v16 }
 0x18a   : > { %v1321_v21 = vmax.f32 %v1066_v19, 0.0  ;;  %v1246_v22 = vadd.f32 %v1245_v26, %v1157_v20 }
 0x18c   : > { %v1391_v27 = vmul.f32 %v3297_v18, %v1321_v21  ;;  %v1324_v37 = vmax.f32 %v1246_v22, 0.0 }
 0x18d   : > { %v978_v28 = vpop.f32.mrf.mxu2 }
 0x18e   : > { %v979_v29 = vadd.f32 %v978_v28, %v3286_v5  ;;  %v1067_v34 = vpop.f32.mrf.mxu3  ;;  %v1459_v35 = vadd.f32 %v1392_v23, %v1391_v27  ;;  %v1394_v45 = vmul.f32 %v3294_v14, %v1324_v37 }
 0x18f   : > { %v1159_v36 = vpop.f32.mrf.mxu0 }
 0x190   : > { %v1068_v38 = vadd.f32 %v1067_v34, %v979_v29  ;;  %v1160_v39 = vadd.f32 %v1159_v36, %v3281_v3  ;;  %v1248_v40 = vpop.f32.mrf.mxu1  ;;  %1460 = vadd.xlane.f32.xlu2 %v1459_v35 }
 0x192   : > { %v1323_v42 = vmax.f32 %v1068_v38, 0.0  ;;  %1020 = vmatmul.bf16.gmra.mxu2 %v3226_v56  ;;  %1198 = vmatmul.bf16.gmra.mxu0 %v3226_v56  ;;  %v1249_v43 = vadd.f32 %v1248_v40, %v1160_v39 }
 0x193   : > { %1109 = vmatmul.bf16.gmra.mxu3 %v3228_v57  ;;  %1287 = vmatmul.bf16.gmra.mxu1 %v3228_v57 }
 0x194   : > { %v1393_v44 = vmul.f32 %v3297_v18, %v1323_v42  ;;  %v1326_v60 = vmax.f32 %v1249_v43, 0.0 }
 0x195   : > { %v981_v46 = vpop.f32.mrf.mxu2 }
 0x196   : > { %v982_v47 = vadd.f32 %v981_v46, %v3286_v5  ;;  %v1070_v48 = vpop.f32.mrf.mxu3  ;;  %v1462_v49 = vadd.f32 %v1394_v45, %v1393_v44  ;;  %v1396_v57 = vmul.f32 %v3294_v14, %v1326_v60 }
 0x197   : > { %v1161_v50 = vpop.f32.mrf.mxu0 }
 0x198   : > { %v1071_v51 = vadd.f32 %v1070_v48, %v982_v47  ;;  %v1162_v56 = vadd.f32 %v1161_v50, %v3281_v3  ;;  %v1250_v52 = vpop.f32.mrf.mxu1  ;;  %1463 = vadd.xlane.f32.xlu2 %v1462_v49 }
 0x19a   : > { %v1325_v61 = vmax.f32 %v1071_v51, 0.0  ;;  %v1251_v54 = vadd.f32 %v1250_v52, %v1162_v56 }
 0x19c   : > { %v1395_v53 = vmul.f32 %v3297_v18, %v1325_v61  ;;  %v1328_v4 = vmax.f32 %v1251_v54, 0.0 }
 0x19d   : > { %v983_v55 = vpop.f32.mrf.mxu2 }
 0x19e   : > { %v984_v62 = vadd.f32 %v983_v55, %v3286_v5  ;;  %v1072_v63 = vpop.f32.mrf.mxu3  ;;  %v1465_v2 = vadd.f32 %v1396_v57, %v1395_v53  ;;  %v1398_v13 = vmul.f32 %v3294_v14, %v1328_v4 }
 0x19f   : > { %v1164_v6 = vpop.f32.mrf.mxu0 }
 0x1a0   : > { %v1073_v7 = vadd.f32 %v1072_v63, %v984_v62  ;;  %v1165_v8 = vadd.f32 %v1164_v6, %v3281_v3  ;;  %v1253_v9 = vpop.f32.mrf.mxu1  ;;  %1466 = vadd.xlane.f32.xlu0 %v1465_v2 }
 0x1a2   : > { %v1327_v10 = vmax.f32 %v1073_v7, 0.0  ;;  %1025 = vmatmul.bf16.gmra.mxu2 %v3238_v24  ;;  %1203 = vmatmul.bf16.gmra.mxu0 %v3238_v24  ;;  %v1254_v11 = vadd.f32 %v1253_v9, %v1165_v8 }
 0x1a3   : > { %1114 = vmatmul.bf16.gmra.mxu3 %v3240_v25  ;;  %1292 = vmatmul.bf16.gmra.mxu1 %v3240_v25 }
 0x1a4   : > { %v1397_v12 = vmul.f32 %v3297_v18, %v1327_v10  ;;  %v1330_v19 = vmax.f32 %v1254_v11, 0.0 }
 0x1a5   : > { %v986_v15 = vpop.f32.mrf.mxu2 }
 0x1a6   : > { %v987_v32 = vadd.f32 %v986_v15, %v3286_v5  ;;  %v1075_v16 = vpop.f32.mrf.mxu3  ;;  %v1468_v17 = vadd.f32 %v1398_v13, %v1397_v12  ;;  %v1400_v25 = vmul.f32 %v3294_v14, %v1330_v19 }
 0x1a7   : > { %v1166_v33 = vpop.f32.mrf.mxu0 }
 0x1a8   : > { %v1076_v20 = vadd.f32 %v1075_v16, %v987_v32  ;;  %v1167_v26 = vadd.f32 %v1166_v33, %v3281_v3  ;;  %v1255_v24 = vpop.f32.mrf.mxu1  ;;  %1469 = vadd.xlane.f32.xlu1 %v1468_v17  ;;  %s2740_s15 = spop %2739 }
 0x1aa   : > { %v1329_v21 = vmax.f32 %v1076_v20, 0.0  ;;  %v1256_v27 = vadd.f32 %v1255_v24, %v1167_v26 }
 0x1ac   : > { %v1399_v22 = vmul.f32 %v3297_v18, %v1329_v21  ;;  %v1332_v36 = vmax.f32 %v1256_v27, 0.0 }
 0x1ad   : > { %v988_v23 = vpop.f32.mrf.mxu2 }
 0x1ae   : > { %v989_v28 = vadd.f32 %v988_v23, %v3286_v5  ;;  %v1077_v29 = vpop.f32.mrf.mxu3  ;;  %v1471_v34 = vadd.f32 %v1400_v25, %v1399_v22  ;;  %v1402_v41 = vmul.f32 %v3294_v14, %v1332_v36 }
 0x1af   : > { %v1169_v35 = vpop.f32.mrf.mxu0 }
 0x1b0   : > { %v1078_v37 = vadd.f32 %v1077_v29, %v989_v28  ;;  %v1170_v38 = vadd.f32 %v1169_v35, %v3281_v3  ;;  %v1258_v39 = vpop.f32.mrf.mxu1  ;;  %1472 = vadd.xlane.f32.xlu2 %v1471_v34 }
 0x1b2   : > { %v1331_v40 = vmax.f32 %v1078_v37, 0.0  ;;  %1030 = vmatmul.bf16.gmra.mxu2 %v3250_v58  ;;  %1208 = vmatmul.bf16.gmra.mxu0 %v3250_v58  ;;  %v1259_v43 = vadd.f32 %v1258_v39, %v1170_v38 }
 0x1b3   : > { %1119 = vmatmul.bf16.gmra.mxu3 %v3252_v59  ;;  %1297 = vmatmul.bf16.gmra.mxu1 %v3252_v59 }
 0x1b4   : > { %v1401_v42 = vmul.f32 %v3297_v18, %v1331_v40  ;;  %v1334_v49 = vmax.f32 %v1259_v43, 0.0 }
 0x1b5   : > { %v991_v44 = vpop.f32.mrf.mxu2 }
 0x1b6   : > { %v992_v45 = vadd.f32 %v991_v44, %v3286_v5  ;;  %v1080_v46 = vpop.f32.mrf.mxu3  ;;  %v1474_v47 = vadd.f32 %v1402_v41, %v1401_v42  ;;  %v1404_v59 = vmul.f32 %v3294_v14, %v1334_v49 }
 0x1b7   : > { %v1171_v48 = vpop.f32.mrf.mxu0 }
 0x1b8   : > { %v1081_v50 = vadd.f32 %v1080_v46, %v992_v45  ;;  %v1172_v60 = vadd.f32 %v1171_v48, %v3281_v3  ;;  %v1260_v58 = vpop.f32.mrf.mxu1  ;;  %1475 = vadd.xlane.f32.xlu0 %v1474_v47 }
 0x1ba   : > { %v1333_v51 = vmax.f32 %v1081_v50, 0.0  ;;  %v1261_v52 = vadd.f32 %v1260_v58, %v1172_v60 }
 0x1bc   : > { %v1403_v56 = vmul.f32 %v3297_v18, %v1333_v51  ;;  %v1336_v62 = vmax.f32 %v1261_v52, 0.0 }
 0x1bd   : > { %v993_v61 = vpop.f32.mrf.mxu2 }
 0x1be   : > { %v994_v57 = vadd.f32 %v993_v61, %v3286_v5  ;;  %v1082_v53 = vpop.f32.mrf.mxu3  ;;  %v1477_v54 = vadd.f32 %v1404_v59, %v1403_v56  ;;  %v1406_v7 = vmul.f32 %v3294_v14, %v1336_v62  ;;  %v3386_v56 = vstv %s2740_s15 }
 0x1bf   : > { %v1174_v55 = vpop.f32.mrf.mxu0 }
 0x1c0   : > { %v1083_v63 = vadd.f32 %v1082_v53, %v994_v57  ;;  %v1175_v2 = vadd.f32 %v1174_v55, %v3281_v3  ;;  %v1263_v6 = vpop.f32.mrf.mxu1  ;;  %1478 = vadd.xlane.f32.xlu1 %v1477_v54 }
 0x1c2   : > { %v1335_v4 = vmax.f32 %v1083_v63, 0.0  ;;  %1035 = vmatmul.bf16.gmra.mxu2 %v3262_v30  ;;  %1213 = vmatmul.bf16.gmra.mxu0 %v3262_v30  ;;  %v1264_v9 = vadd.f32 %v1263_v6, %v1175_v2 }
 0x1c3   : > { %1124 = vmatmul.bf16.gmra.mxu3 %v3264_v31  ;;  %1302 = vmatmul.bf16.gmra.mxu1 %v3264_v31 }
 0x1c4   : > { %v1405_v8 = vmul.f32 %v3297_v18, %v1335_v4  ;;  %v1338_v32 = vmax.f32 %v1264_v9, 0.0 }
 0x1c5   : > { %v996_v10 = vpop.f32.mrf.mxu2 }
 0x1c6   : > { %v997_v11 = vadd.f32 %v996_v10, %v3286_v5  ;;  %v1085_v12 = vpop.f32.mrf.mxu3  ;;  %v1480_v13 = vadd.f32 %v1406_v7, %v1405_v8  ;;  %v1408_v31 = vmul.f32 %v3294_v14, %v1338_v32 }
 0x1c7   : > { %v1176_v15 = vpop.f32.mrf.mxu0 }
 0x1c8   : > { %v1086_v16 = vadd.f32 %v1085_v12, %v997_v11  ;;  %v1177_v17 = vadd.f32 %v1176_v15, %v3281_v3  ;;  %v1265_v30 = vpop.f32.mrf.mxu1  ;;  %1481 = vadd.xlane.f32.xlu2 %v1480_v13 }
 0x1ca   : > { %v1337_v33 = vmax.f32 %v1086_v16, 0.0  ;;  %v1266_v20 = vadd.f32 %v1265_v30, %v1177_v17 }
 0x1cc   : > { %v1407_v19 = vmul.f32 %v3297_v18, %v1337_v33  ;;  %v1340_v27 = vmax.f32 %v1266_v20, 0.0  ;;  %v2980_v20 = vmov 0  }
 0x1cd   : > { %v998_v26 = vpop.f32.mrf.mxu2  ;;  %2811 = vset.pattern.permute.xlu2 %v2980_v20  ;;  %2812 = vset.pattern.permute.xlu0 %v2980_v20 }
 0x1ce   : > { %v999_v24 = vadd.f32 %v998_v26, %v3286_v5  ;;  %v1087_v21 = vpop.f32.mrf.mxu3  ;;  %v1483_v25 = vadd.f32 %v1408_v31, %v1407_v19  ;;  %v1410_v35 = vmul.f32 %v3294_v14, %v1340_v27  ;;  %2813 = vset.pattern.permute.xlu1 %v2980_v20 }
 0x1cf   : > { %v1179_v22 = vpop.f32.mrf.mxu0 }
 0x1d0   : > { %v1088_v23 = vadd.f32 %v1087_v21, %v999_v24  ;;  %v1180_v28 = vadd.f32 %v1179_v22, %v3281_v3  ;;  %v1268_v29 = vpop.f32.mrf.mxu1  ;;  %1484 = vadd.xlane.f32.xlu0 %v1483_v25 }
 0x1d2   : > { %v1339_v34 = vmax.f32 %v1088_v23, 0.0  ;;  %1040 = vmatmul.bf16.gmra.mxu2 %v3274_v0  ;;  %1218 = vmatmul.bf16.gmra.mxu0 %v3274_v0  ;;  %v1269_v37 = vadd.f32 %v1268_v29, %v1180_v28 }
 0x1d3   : > { %1129 = vmatmul.bf16.gmra.mxu3 %v3276_v1  ;;  %1307 = vmatmul.bf16.gmra.mxu1 %v3276_v1 }
 0x1d4   : > { %v1409_v36 = vmul.f32 %v3297_v18, %v1339_v34  ;;  %v1342_v43 = vmax.f32 %v1269_v37, 0.0 }
 0x1d5   : > { %v1001_v38 = vpop.f32.mrf.mxu2 }
 0x1d6   : > { %v1002_v39 = vadd.f32 %v1001_v38, %v3286_v5  ;;  %v1090_v40 = vpop.f32.mrf.mxu3  ;;  %v1486_v41 = vadd.f32 %v1410_v35, %v1409_v36  ;;  %v1412_v1 = vmul.f32 %v3294_v14, %v1342_v43 }
 0x1d7   : > { %v1181_v42 = vpop.f32.mrf.mxu0 }
 0x1d8   : > { %v1091_v44 = vadd.f32 %v1090_v40, %v1002_v39  ;;  %1487 = vadd.xlane.f32.xlu1 %v1486_v41  ;;  %v1182_v0 = vadd.f32 %v1181_v42, %v3281_v3  ;;  %v1270_v46 = vpop.f32.mrf.mxu1 }
 0x1da   : > { %v1341_v45 = vmax.f32 %v1091_v44, 0.0  ;;  %v1271_v49 = vadd.f32 %v1270_v46, %v1182_v0 }
 0x1dc   : > { %v1411_v47 = vmul.f32 %v3297_v18, %v1341_v45  ;;  %v1344_v52 = vmax.f32 %v1271_v49, 0.0 }
 0x1dd   : > { %v1003_v48 = vpop.f32.mrf.mxu2 }
 0x1de   : > { %v1004_v50 = vadd.f32 %v1003_v48, %v3286_v5  ;;  %v1489_v60 = vadd.f32 %v1412_v1, %v1411_v47  ;;  %v1092_v58 = vpop.f32.mrf.mxu3  ;;  %v1414_v2 = vmul.f32 %v3294_v14, %v1344_v52 }
 0x1df   : > { %v1184_v59 = vpop.f32.mrf.mxu0 }
 0x1e0   : > { %v1093_v51 = vadd.f32 %v1092_v58, %v1004_v50  ;;  %1490 = vadd.xlane.f32.xlu2 %v1489_v60  ;;  %v1185_v57 = vadd.f32 %v1184_v59, %v3281_v3  ;;  %v1273_v55 = vpop.f32.mrf.mxu1 }
 0x1e2   : > { %v1343_v61 = vmax.f32 %v1093_v51, 0.0  ;;  %v1274_v8 = vadd.f32 %v1273_v55, %v1185_v57 }
 0x1e3   : > { %v1449_v53 = vpop.xlane.xlu0 %1448 }
 0x1e4   : > { %v1413_v54 = vmul.f32 %v3297_v18, %v1343_v61  ;;  %v1546_v62 = vadd.f32 %v3386_v56, %v1449_v53  ;;  %v1346_v17 = vmax.f32 %v1274_v8, 0.0 }
 0x1e5   : > { %v1006_v63 = vpop.f32.mrf.mxu2 }
 0x1e6   : > { %v1610_v6 = vperm.slane %v1546_v62, 0  ;;  %v1611_v4 = vperm.slane %v1546_v62, 1  ;;  %v1612_v7 = vperm.slane %v1546_v62, 2  ;;  %v1613_v9 = vperm.slane %v1546_v62, 3  ;;  %v1095_v15 = vpop.f32.mrf.mxu3 }
 0x1e7   : > { %v1614_v10 = vperm.slane %v1546_v62, 4  ;;  %v1007_v11 = vadd.f32 %v1006_v63, %v3286_v5  ;;  %v1492_v12 = vadd.f32 %v1414_v2, %v1413_v54  ;;  %v1615_v13 = vperm.slane %v1546_v62, 5  ;;  %v3393_v31 = vpop.f32.mrf.mxu0 }
 0x1e8   : > { %1866 = vst [vmem:[#allocation1] ss:$9 sm:$0xff] %v1610_v6  ;;  %v1616_v32 = vperm.slane %v1546_v62, 6  ;;  %v1617_v30 = vperm.slane %v1546_v62, 7  ;;  %v3396_v24 = vpop.f32.mrf.mxu1  ;;  %v1416_v21 = vmul.f32 %v3294_v14, %v1346_v17  ;;  %v1187_v2 = vadd.f32 %v3393_v31, %v3281_v3 }
 0x1e9   : > { %1868 = vst [vmem:[#allocation1 + $0x1] ss:$9 sm:$0xff] %v1611_v4  ;;  %v1096_v16 = vadd.f32 %v1095_v15, %v1007_v11  ;;  %1493 = vadd.xlane.f32.xlu0 %v1492_v12 }
 0x1ea   : > { %1870 = vst [vmem:[#allocation1 + $0x2] ss:$9 sm:$0xff] %v1612_v7  ;;  %v1276_v12 = vadd.f32 %v3396_v24, %v1187_v2 }
 0x1eb   : > { %1872 = vst [vmem:[#allocation1 + $0x3] ss:$9 sm:$0xff] %v1613_v9  ;;  %v1345_v33 = vmax.f32 %v1096_v16, 0.0  ;;  %v1452_v19 = vpop.xlane.xlu0 %1451 }
 0x1ec   : > { %1874 = vst [vmem:[#allocation1 + $0x4] ss:$9 sm:$0xff] %v1614_v10  ;;  %v1547_v25 = vadd.f32 %v3386_v56, %v1452_v19  ;;  %v1348_v31 = vmax.f32 %v1276_v12, 0.0 }
 0x1ed   : > { %1876 = vst [vmem:[#allocation1 + $0x5] ss:$9 sm:$0xff] %v1615_v13  ;;  %v1415_v26 = vmul.f32 %v3297_v18, %v1345_v33  ;;  %v1008_v40 = vpop.f32.mrf.mxu2 }
 0x1ee   : > { %1878 = vst [vmem:[#allocation1 + $0x6] ss:$9 sm:$0xff] %v1616_v32  ;;  %v1618_v27 = vperm.slane %v1547_v25, 0  ;;  %v1619_v23 = vperm.slane %v1547_v25, 1  ;;  %v1620_v28 = vperm.slane %v1547_v25, 2  ;;  %v1621_v34 = vperm.slane %v1547_v25, 3  ;;  %v1097_v42 = vpop.f32.mrf.mxu3 }
 0x1ef   : > { %1880 = vst [vmem:[#allocation1 + $0x7] ss:$9 sm:$0xff] %v1617_v30  ;;  %v1495_v22 = vadd.f32 %v1416_v21, %v1415_v26  ;;  %v3400_v35 = vpop.f32.mrf.mxu0  ;;  %v1622_v36 = vperm.slane %v1547_v25, 4  ;;  %v1623_v37 = vperm.slane %v1547_v25, 5  ;;  %v1624_v39 = vperm.slane %v1547_v25, 6 }
 0x1f0   : > { %v3402_v38 = vpop.f32.mrf.mxu1  ;;  %v1625_v41 = vperm.slane %v1547_v25, 7  ;;  %v1009_v62 = vadd.f32 %v1008_v40, %v3286_v5  ;;  %v1418_v21 = vmul.f32 %v3294_v14, %v1348_v31 }
 0x1f1   : > { %1496 = vadd.xlane.f32.xlu1 %v1495_v22 }
 0x1f2   : > { %v1098_v7 = vadd.f32 %v1097_v42, %v1009_v62 }
 0x1f3   : > { %v1455_v43 = vpop.xlane.xlu1 %1454 }
 0x1f4   : > { %v1548_v44 = vadd.f32 %v3386_v56, %v1455_v43  ;;  %v1347_v16 = vmax.f32 %v1098_v7, 0.0 }
 0x1f5   : > { %v1011_v47 = vpop.f32.mrf.mxu2 }
 0x1f6   : > { %v1881_v29 = vld [vmem:[#allocation1] sm:$0xff]  ;;  %v1626_v0 = vperm.slane %v1548_v44, 0  ;;  %v1627_v1 = vperm.slane %v1548_v44, 1  ;;  %v1628_v48 = vperm.slane %v1548_v44, 2  ;;  %v1629_v50 = vperm.slane %v1548_v44, 3  ;;  %v1100_v60 = vpop.f32.mrf.mxu3 }
 0x1f7   : > { %1882 = vst [vmem:[#allocation1] ss:$9 sm:$0xff] %v1618_v27  ;;  %v3405_v45 = vpop.f32.mrf.mxu0  ;;  %v1630_v58 = vperm.slane %v1548_v44, 4  ;;  %v1631_v51 = vperm.slane %v1548_v44, 5  ;;  %v1632_v59 = vperm.slane %v1548_v44, 6  ;;  %v1633_v52 = vperm.slane %v1548_v44, 7 }
 0x1f8   : > { %1883 = vst [vmem:[#allocation1 + $0x1] ss:$9 sm:$0xff] %v1619_v23  ;;  %2162 = vperm.xlu2 %2811, %v1881_v29   ;;  %v3407_v46 = vpop.f32.mrf.mxu1  ;;  %v1417_v26 = vmul.f32 %v3297_v18, %v1347_v16  ;;  %v1012_v25 = vadd.f32 %v1011_v47, %v3286_v5  ;;  %v1190_v23 = vadd.f32 %v3400_v35, %v3281_v3 }
 0x1f9   : > { %1884 = vst [vmem:[#allocation1 + $0x2] ss:$9 sm:$0xff] %v1620_v28  ;;  %v1192_v7 = vadd.f32 %v3405_v45, %v3281_v3 }
 0x1fa   : > { %1885 = vst [vmem:[#allocation1 + $0x3] ss:$9 sm:$0xff] %v1621_v34  ;;  %v1498_v27 = vadd.f32 %v1418_v21, %v1417_v26  ;;  %v1279_v43 = vadd.f32 %v3402_v38, %v1190_v23 }
 0x1fb   : > { %1886 = vst [vmem:[#allocation1 + $0x4] ss:$9 sm:$0xff] %v1622_v36  ;;  %v1458_v61 = vpop.xlane.xlu1 %1457 }
 0x1fc   : > { %1887 = vst [vmem:[#allocation1 + $0x5] ss:$9 sm:$0xff] %v1623_v37  ;;  %v1549_v54 = vadd.f32 %v3386_v56, %v1458_v61  ;;  %v1101_v37 = vadd.f32 %v1100_v60, %v1012_v25 }
 0x1fd   : > { %1888 = vst [vmem:[#allocation1 + $0x6] ss:$9 sm:$0xff] %v1624_v39  ;;  %v3414_v55 = vpop.f32.mrf.mxu2 }
 0x1fe   : > { %1889 = vst [vmem:[#allocation1 + $0x7] ss:$9 sm:$0xff] %v1625_v41  ;;  %v3417_v63 = vpop.f32.mrf.mxu3  ;;  %v1634_v6 = vperm.slane %v1549_v54, 0  ;;  %v1635_v4 = vperm.slane %v1549_v54, 1  ;;  %v1636_v8 = vperm.slane %v1549_v54, 2  ;;  %v1637_v10 = vperm.slane %v1549_v54, 3 }
 0x1ff   : > { %v3409_v57 = vpop.f32.mrf.mxu0  ;;  %v1638_v13 = vperm.slane %v1549_v54, 4  ;;  %v1639_v15 = vperm.slane %v1549_v54, 5  ;;  %v1640_v17 = vperm.slane %v1549_v54, 6  ;;  %v1641_v33 = vperm.slane %v1549_v54, 7 }
 0x200   : > { %v3411_v53 = vpop.f32.mrf.mxu1  ;;  %v1014_v62 = vadd.f32 %v3414_v55, %v3286_v5 }
 0x202   : > { %v1103_v12 = vadd.f32 %v3417_v63, %v1014_v62 }
 0x203   : > { %v1461_v19 = vpop.xlane.xlu2 %1460 }
 0x204   : > { %v1550_v24 = vadd.f32 %v3386_v56, %v1461_v19  ;;  %v1351_v45 = vmax.f32 %v1103_v12, 0.0 }
 0x205   : > { %v1890_v49 = vld [vmem:[#allocation1] sm:$0xff]  ;;  %v3426_v30 = vpop.f32.mrf.mxu2 }
 0x206   : > { %1891 = vst [vmem:[#allocation1] ss:$9 sm:$0xff] %v1626_v0  ;;  %2165 = vperm.xlu0 %2812, %v1890_v49   ;;  %v3428_v20 = vpop.f32.mrf.mxu3  ;;  %v1642_v28 = vperm.slane %v1550_v24, 0  ;;  %v1643_v34 = vperm.slane %v1550_v24, 1  ;;  %v1644_v39 = vperm.slane %v1550_v24, 2  ;;  %v1645_v41 = vperm.slane %v1550_v24, 3 }
 0x207   : > { %1892 = vst [vmem:[#allocation1 + $0x1] ss:$9 sm:$0xff] %v1627_v1  ;;  %v3421_v11 = vpop.f32.mrf.mxu0  ;;  %v1646_v44 = vperm.slane %v1550_v24, 4  ;;  %v1647_v0 = vperm.slane %v1550_v24, 5  ;;  %v1349_v1 = vmax.f32 %v1101_v37, 0.0  ;;  %v1648_v35 = vperm.slane %v1550_v24, 6 }
 0x208   : > { %1893 = vst [vmem:[#allocation1 + $0x2] ss:$9 sm:$0xff] %v1628_v48  ;;  %v3424_v32 = vpop.f32.mrf.mxu1  ;;  %v1649_v47 = vperm.slane %v1550_v24, 7  ;;  %v1350_v48 = vmax.f32 %v1279_v43, 0.0 }
 0x209   : > { %1894 = vst [vmem:[#allocation1 + $0x3] ss:$9 sm:$0xff] %v1629_v50 }
 0x20a   : > { %1895 = vst [vmem:[#allocation1 + $0x4] ss:$9 sm:$0xff] %v1630_v58  ;;  %v1419_v58 = vmul.f32 %v3297_v18, %v1349_v1  ;;  %v1420_v61 = vmul.f32 %v3294_v14, %v1350_v48 }
 0x20b   : > { %1896 = vst [vmem:[#allocation1 + $0x5] ss:$9 sm:$0xff] %v1631_v51  ;;  %v1464_v49 = vpop.xlane.xlu2 %1463 }
 0x20c   : > { %1897 = vst [vmem:[#allocation1 + $0x6] ss:$9 sm:$0xff] %v1632_v59  ;;  %v1551_v51 = vadd.f32 %v3386_v56, %v1464_v49 }
 0x20d   : > { %1898 = vst [vmem:[#allocation1 + $0x7] ss:$9 sm:$0xff] %v1633_v52  ;;  %v1018_v36 = vpop.f32.mrf.mxu2 }
 0x20e   : > { %v1107_v42 = vpop.f32.mrf.mxu3  ;;  %v1019_v54 = vadd.f32 %v1018_v36, %v3286_v5  ;;  %v1653_v16 = vperm.slane %v1551_v51, 3  ;;  %v1656_v19 = vperm.slane %v1551_v51, 6  ;;  %v1657_v21 = vperm.slane %v1551_v51, 7 }
 0x20f   : > { %v3434_v22 = vpop.f32.mrf.mxu0 }
 0x210   : > { %v3438_v29 = vpop.f32.mrf.mxu1 }
 0x214   : > { %v1899_v9 = vld [vmem:[#allocation1] sm:$0xff] }
 0x215   : > { %1900 = vst [vmem:[#allocation1] ss:$9 sm:$0xff] %v1634_v6  ;;  %2168 = vperm.xlu1 %2813, %v1899_v9   ;;  %v3446_v59 = vpop.f32.mrf.mxu2  ;;  %v1197_v6 = vadd.f32 %v3421_v11, %v3281_v3  ;;  %v1651_v9 = vperm.slane %v1551_v51, 1  ;;  %v1655_v11 = vperm.slane %v1551_v51, 5 }
 0x216   : > { %1901 = vst [vmem:[#allocation1 + $0x1] ss:$9 sm:$0xff] %v1635_v4  ;;  %v3454_v2 = vpop.f32.mrf.mxu3  ;;  %v1501_v4 = vadd.f32 %v1420_v61, %v1419_v58 }
 0x217   : > { %1902 = vst [vmem:[#allocation1 + $0x2] ss:$9 sm:$0xff] %v1636_v8  ;;  %v1201_v50 = vpop.f32.mrf.mxu0  ;;  %v1650_v8 = vperm.slane %v1551_v51, 0  ;;  %v1286_v55 = vadd.f32 %v3424_v32, %v1197_v6  ;;  %v1467_v32 = vpop.xlane.xlu0 %1466 }
 0x218   : > { %1903 = vst [vmem:[#allocation1 + $0x3] ss:$9 sm:$0xff] %v1637_v10  ;;  %v1202_v60 = vadd.f32 %v1201_v50, %v3281_v3  ;;  %v1290_v38 = vpop.f32.mrf.mxu1  ;;  %v1108_v10 = vadd.f32 %v1107_v42, %v1019_v54  ;;  %v1552_v36 = vadd.f32 %v3386_v56, %v1467_v32 }
 0x219   : > { %1904 = vst [vmem:[#allocation1 + $0x4] ss:$9 sm:$0xff] %v1638_v13  ;;  %v1652_v13 = vperm.slane %v1551_v51, 2  ;;  %v1356_v24 = vmax.f32 %v1286_v55, 0.0 }
 0x21a   : > { %1905 = vst [vmem:[#allocation1 + $0x5] ss:$9 sm:$0xff] %v1639_v15  ;;  %v3448_v52 = vadd.f32 %v1290_v38, %v1202_v60  ;;  %v1355_v31 = vmax.f32 %v1108_v10, 0.0  ;;  %v1658_v42 = vperm.slane %v1552_v36, 0  ;;  %v1659_v43 = vperm.slane %v1552_v36, 1 }
 0x21b   : > { %1906 = vst [vmem:[#allocation1 + $0x6] ss:$9 sm:$0xff] %v1640_v17  ;;  %v1281_v17 = vadd.f32 %v3407_v46, %v1192_v7  ;;  %v1661_v1 = vperm.slane %v1552_v36, 3  ;;  %v1664_v49 = vperm.slane %v1552_v36, 6  ;;  %v1665_v50 = vperm.slane %v1552_v36, 7  ;;  %v1470_v60 = vpop.xlane.xlu1 %1469 }
 0x21c   : > { %1907 = vst [vmem:[#allocation1 + $0x7] ss:$9 sm:$0xff] %v1641_v33  ;;  %v1654_v33 = vperm.slane %v1551_v51, 4  ;;  %v1425_v46 = vmul.f32 %v3297_v18, %v1355_v31  ;;  %v1553_v38 = vadd.f32 %v3386_v56, %v1470_v60  ;;  %v1017_v10 = vadd.f32 %v3426_v30, %v3286_v5 }
 0x21d   : > { %v1023_v26 = vpop.f32.mrf.mxu2  ;;  %v1352_v25 = vmax.f32 %v1281_v17, 0.0  ;;  %v1195_v17 = vadd.f32 %v3409_v57, %v3281_v3 }
 0x21e   : > { %v1024_v63 = vadd.f32 %v1023_v26, %v3286_v5  ;;  %v1666_v54 = vperm.slane %v1553_v38, 0  ;;  %v1670_v55 = vperm.slane %v1553_v38, 4 }
 0x21f   : > { %v1422_v37 = vmul.f32 %v3294_v14, %v1352_v25 }
 0x220   : > { %v1293_v48 = vpop.f32.mrf.mxu1 }
 0x221   : > { %1499 = vadd.xlane.f32.xlu2 %v1498_v27  ;;  %v1112_v27 = vpop.f32.mrf.mxu3 }
 0x222   : > { %v3467_v23 = vadd.f32 %v1112_v27, %v1024_v63 }
 0x223   : > { %v3440_v40 = vld [vmem:[#allocation1] sm:$0xff]  ;;  %v1473_v26 = vpop.xlane.xlu2 %1472 }
 0x224   : > { %1909 = vst [vmem:[#allocation1] ss:$9 sm:$0xff] %v1642_v28  ;;  %v1421_v28 = vmul.f32 %v3297_v18, %v1351_v45  ;;  %v1106_v45 = vadd.f32 %v3428_v20, %v1017_v10  ;;  %v1554_v27 = vadd.f32 %v3386_v56, %v1473_v26  ;;  %v1360_v26 = vmax.f32 %v3448_v52, 0.0 }
 0x225   : > { %1910 = vst [vmem:[#allocation1 + $0x1] ss:$9 sm:$0xff] %v1643_v34  ;;  %v1426_v34 = vmul.f32 %v3294_v14, %v1356_v24  ;;  %v1026_v58 = vpop.f32.mrf.mxu2 }
 0x226   : > { %1911 = vst [vmem:[#allocation1 + $0x2] ss:$9 sm:$0xff] %v1644_v39  ;;  %v1027_v51 = vadd.f32 %v1026_v58, %v3286_v5  ;;  %v1353_v32 = vmax.f32 %v1106_v45, 0.0 }
 0x227   : > { %1912 = vst [vmem:[#allocation1 + $0x3] ss:$9 sm:$0xff] %v1645_v41  ;;  %v1510_v39 = vadd.f32 %v1426_v34, %v1425_v46  ;;  %v1504_v41 = vadd.f32 %v1422_v37, %v1421_v28 }
 0x228   : > { %1913 = vst [vmem:[#allocation1 + $0x4] ss:$9 sm:$0xff] %v1646_v44  ;;  %v1660_v44 = vperm.slane %v1552_v36, 2  ;;  %v3479_v6 = vpop.f32.mrf.mxu1  ;;  %v1423_v37 = vmul.f32 %v3297_v18, %v1353_v32 }
 0x229   : > { %1914 = vst [vmem:[#allocation1 + $0x5] ss:$9 sm:$0xff] %v1647_v0  ;;  %v1115_v7 = vpop.f32.mrf.mxu3 }
 0x22a   : > { %1915 = vst [vmem:[#allocation1 + $0x6] ss:$9 sm:$0xff] %v1648_v35  ;;  %v1204_v35 = vpop.f32.mrf.mxu0 }
 0x22b   : > { %1916 = vst [vmem:[#allocation1 + $0x7] ss:$9 sm:$0xff] %v1649_v47  ;;  %v1662_v47 = vperm.slane %v1552_v36, 4  ;;  %v1205_v62 = vadd.f32 %v1204_v35, %v3281_v3  ;;  %v1678_v35 = vperm.slane %v1554_v27, 4  ;;  %v1476_v60 = vpop.xlane.xlu0 %1475 }
 0x22d   : > { %v3492_v20 = vpop.f32.mrf.mxu2 }
 0x230   : > { %1502 = vadd.xlane.f32.xlu0 %v1501_v4  ;;  %v1667_v4 = vperm.slane %v1553_v38, 1  ;;  %v1298_v25 = vpop.f32.mrf.mxu1 }
 0x232   : > { %v3461_v15 = vld [vmem:[#allocation1] sm:$0xff]  ;;  %v3476_v61 = vpop.f32.mrf.mxu0 }
 0x233   : > { %1918 = vst [vmem:[#allocation1] ss:$9 sm:$0xff] %v1650_v8  ;;  %v1668_v8 = vperm.slane %v1553_v38, 2 }
 0x234   : > { %1919 = vst [vmem:[#allocation1 + $0x1] ss:$9 sm:$0xff] %v1651_v9  ;;  %v1116_v9 = vadd.f32 %v1115_v7, %v1027_v51  ;;  %v1555_v51 = vadd.f32 %v3386_v56, %v1476_v60 }
 0x235   : > { %1920 = vst [vmem:[#allocation1 + $0x2] ss:$9 sm:$0xff] %v1652_v13  ;;  %v1669_v13 = vperm.slane %v1553_v38, 3 }
 0x236   : > { %1921 = vst [vmem:[#allocation1 + $0x3] ss:$9 sm:$0xff] %v1653_v16  ;;  %v1294_v16 = vadd.f32 %v1293_v48, %v1205_v62  ;;  %v1361_v31 = vmax.f32 %v1116_v9, 0.0  ;;  %v1031_v48 = vpop.f32.mrf.mxu2  ;;  %v1683_v62 = vperm.slane %v1555_v51, 1  ;;  %v1686_v10 = vperm.slane %v1555_v51, 4 }
 0x237   : > { %1922 = vst [vmem:[#allocation1 + $0x4] ss:$9 sm:$0xff] %v1654_v33  ;;  %v1671_v33 = vperm.slane %v1553_v38, 5 }
 0x238   : > { %1923 = vst [vmem:[#allocation1 + $0x5] ss:$9 sm:$0xff] %v1655_v11  ;;  %1511 = vadd.xlane.f32.xlu0 %v1510_v39  ;;  %v1672_v11 = vperm.slane %v1553_v38, 6  ;;  %v1362_v30 = vmax.f32 %v1294_v16, 0.0  ;;  %v1431_v57 = vmul.f32 %v3297_v18, %v1361_v31  ;;  %v1674_v39 = vperm.slane %v1554_v27, 0  ;;  %v3511_v16 = vpop.f32.mrf.mxu1  ;;  %v1479_v31 = vpop.xlane.xlu1 %1478 }
 0x239   : > { %1924 = vst [vmem:[#allocation1 + $0x6] ss:$9 sm:$0xff] %v1656_v19  ;;  %2171 = vperm.xlu2 %2811, %v3440_v40   ;;  %v1663_v40 = vperm.slane %v1552_v36, 5  ;;  %v1673_v19 = vperm.slane %v1553_v38, 7 }
 0x23a   : > { %1925 = vst [vmem:[#allocation1 + $0x7] ss:$9 sm:$0xff] %v1657_v21  ;;  %v1209_v24 = vpop.f32.mrf.mxu0  ;;  %v1284_v21 = vadd.f32 %v3411_v53, %v1195_v17  ;;  %v1432_v28 = vmul.f32 %v3294_v14, %v1362_v30  ;;  %v3497_v53 = vpop.f32.mrf.mxu3  ;;  %v1688_v17 = vperm.slane %v1555_v51, 6  ;;  %v1556_v30 = vadd.f32 %v3386_v56, %v1479_v31 }
 0x23b   : > { %v1210_v63 = vadd.f32 %v1209_v24, %v3281_v3 }
 0x23c   : > { %v1354_v34 = vmax.f32 %v1284_v21, 0.0  ;;  %v1519_v36 = vadd.f32 %v1432_v28, %v1431_v57  ;;  %v1690_v57 = vperm.slane %v1556_v30, 0  ;;  %v1693_v52 = vperm.slane %v1556_v30, 3 }
 0x23d   : > { %v3494_v46 = vadd.f32 %v1298_v25, %v1210_v63 }
 0x23f   : > { %1505 = vadd.xlane.f32.xlu1 %v1504_v41  ;;  %v1675_v41 = vperm.slane %v1554_v27, 1 }
 0x240   : > { %1520 = vadd.xlane.f32.xlu0 %v1519_v36  ;;  %v3523_v25 = vpop.f32.mrf.mxu1 }
 0x241   : > { %v1926_v0 = vld [vmem:[#allocation1] sm:$0xff] }
 0x242   : > { %1927 = vst [vmem:[#allocation1] ss:$9 sm:$0xff] %v1658_v42  ;;  %v1424_v42 = vmul.f32 %v3294_v14, %v1354_v34  ;;  %v1120_v58 = vpop.f32.mrf.mxu3  ;;  %v3507_v9 = vpop.f32.mrf.mxu0 }
 0x243   : > { %1928 = vst [vmem:[#allocation1 + $0x1] ss:$9 sm:$0xff] %v1659_v43  ;;  %v1676_v43 = vperm.slane %v1554_v27, 2 }
 0x244   : > { %1929 = vst [vmem:[#allocation1 + $0x2] ss:$9 sm:$0xff] %v1660_v44 }
 0x245   : > { %1930 = vst [vmem:[#allocation1 + $0x3] ss:$9 sm:$0xff] %v1661_v1  ;;  %v1677_v1 = vperm.slane %v1554_v27, 3 }
 0x246   : > { %1931 = vst [vmem:[#allocation1 + $0x4] ss:$9 sm:$0xff] %v1662_v47  ;;  %v1679_v47 = vperm.slane %v1554_v27, 5 }
 0x247   : > { %1932 = vst [vmem:[#allocation1 + $0x5] ss:$9 sm:$0xff] %v1663_v40  ;;  %v1680_v40 = vperm.slane %v1554_v27, 6 }
 0x248   : > { %1933 = vst [vmem:[#allocation1 + $0x6] ss:$9 sm:$0xff] %v1664_v49  ;;  %v1681_v49 = vperm.slane %v1554_v27, 7  ;;  %v1692_v27 = vperm.slane %v1556_v30, 2 }
 0x249   : > { %1934 = vst [vmem:[#allocation1 + $0x7] ss:$9 sm:$0xff] %v1665_v50  ;;  %v1032_v50 = vadd.f32 %v1031_v48, %v3286_v5 }
 0x24a   : > { %v3520_v21 = vpop.f32.mrf.mxu0  ;;  %v1122_v34 = vpop.f32.mrf.mxu3 }
 0x24b   : > { %v3504_v38 = vadd.f32 %v1120_v58, %v1032_v50 }
 0x250   : > { %v3483_v12 = vld [vmem:[#allocation1] sm:$0xff] }
 0x251   : > { %1936 = vst [vmem:[#allocation1] ss:$9 sm:$0xff] %v1666_v54  ;;  %v1682_v54 = vperm.slane %v1555_v51, 0 }
 0x252   : > { %1937 = vst [vmem:[#allocation1 + $0x1] ss:$9 sm:$0xff] %v1667_v4  ;;  %v1684_v4 = vperm.slane %v1555_v51, 2  ;;  %v3540_v50 = vpop.f32.mrf.mxu3 }
 0x253   : > { %1938 = vst [vmem:[#allocation1 + $0x2] ss:$9 sm:$0xff] %v1668_v8  ;;  %v1685_v8 = vperm.slane %v1555_v51, 3 }
 0x254   : > { %1939 = vst [vmem:[#allocation1 + $0x3] ss:$9 sm:$0xff] %v1669_v13  ;;  %v1022_v13 = vadd.f32 %v3446_v59, %v3286_v5 }
 0x255   : > { %1940 = vst [vmem:[#allocation1 + $0x4] ss:$9 sm:$0xff] %v1670_v55  ;;  %v1687_v55 = vperm.slane %v1555_v51, 5 }
 0x256   : > { %1941 = vst [vmem:[#allocation1 + $0x5] ss:$9 sm:$0xff] %v1671_v33  ;;  %v1200_v33 = vadd.f32 %v3434_v22, %v3281_v3  ;;  %v1111_v45 = vadd.f32 %v3454_v2, %v1022_v13  ;;  %v1430_v2 = vmul.f32 %v3294_v14, %v1360_v26  ;;  %v1212_v13 = vadd.f32 %v3507_v9, %v3281_v3 }
 0x257   : > { %1942 = vst [vmem:[#allocation1 + $0x6] ss:$9 sm:$0xff] %v1672_v11  ;;  %v1689_v11 = vperm.slane %v1555_v51, 7 }
 0x258   : > { %1943 = vst [vmem:[#allocation1 + $0x7] ss:$9 sm:$0xff] %v1673_v19  ;;  %2177 = vperm.xlu1 %2813, %v1926_v0   ;;  %v1507_v0 = vadd.f32 %v1424_v42, %v1423_v37  ;;  %v1359_v19 = vmax.f32 %v3467_v23, 0.0  ;;  %v1289_v59 = vadd.f32 %v3438_v29, %v1200_v33  ;;  %v1357_v24 = vmax.f32 %v1111_v45, 0.0  ;;  %v1033_v29 = vpop.f32.mrf.mxu2  ;;  %v1485_v45 = vpop.xlane.xlu0 %1484 }
 0x259   : > { %v1691_v23 = vperm.slane %v1556_v30, 1  ;;  %v1558_v9 = vadd.f32 %v3386_v56, %v1485_v45 }
 0x25a   : > { %v1429_v22 = vmul.f32 %v3297_v18, %v1359_v19  ;;  %v1358_v63 = vmax.f32 %v1289_v59, 0.0  ;;  %v1427_v32 = vmul.f32 %v3297_v18, %v1357_v24  ;;  %v1127_v19 = vpop.f32.mrf.mxu3 }
 0x25c   : > { %v3530_v36 = vadd.f32 %v1430_v2, %v1429_v22  ;;  %v1428_v37 = vmul.f32 %v3294_v14, %v1358_v63  ;;  %v1706_v63 = vperm.slane %v1558_v9, 0  ;;  %v1707_v2 = vperm.slane %v1558_v9, 1 }
 0x25e   : > { %v1513_v42 = vadd.f32 %v1428_v37, %v1427_v32  ;;  %v1712_v37 = vperm.slane %v1558_v9, 6 }
 0x25f   : > { %v3501_v44 = vld [vmem:[#allocation1] sm:$0xff] }
 0x260   : > { %1945 = vst [vmem:[#allocation1] ss:$9 sm:$0xff] %v1674_v39  ;;  %v1694_v39 = vperm.slane %v1556_v30, 4  ;;  %v3536_v48 = vpop.f32.mrf.mxu2 }
 0x261   : > { %1946 = vst [vmem:[#allocation1 + $0x1] ss:$9 sm:$0xff] %v1675_v41  ;;  %v1695_v41 = vperm.slane %v1556_v30, 5 }
 0x262   : > { %1947 = vst [vmem:[#allocation1 + $0x2] ss:$9 sm:$0xff] %v1676_v43  ;;  %1508 = vadd.xlane.f32.xlu2 %v1507_v0  ;;  %v1697_v43 = vperm.slane %v1556_v30, 7 }
 0x263   : > { %1948 = vst [vmem:[#allocation1 + $0x3] ss:$9 sm:$0xff] %v1677_v1  ;;  %v1482_v1 = vpop.xlane.xlu2 %1481 }
 0x264   : > { %1949 = vst [vmem:[#allocation1 + $0x4] ss:$9 sm:$0xff] %v1678_v35  ;;  %v1216_v35 = vpop.f32.mrf.mxu0 }
 0x265   : > { %1950 = vst [vmem:[#allocation1 + $0x5] ss:$9 sm:$0xff] %v1679_v47  ;;  %v1217_v0 = vadd.f32 %v1216_v35, %v3281_v3  ;;  %v1305_v47 = vpop.f32.mrf.mxu1 }
 0x266   : > { %1951 = vst [vmem:[#allocation1 + $0x6] ss:$9 sm:$0xff] %v1680_v40  ;;  %v1557_v40 = vadd.f32 %v3386_v56, %v1482_v1 }
 0x267   : > { %1952 = vst [vmem:[#allocation1 + $0x7] ss:$9 sm:$0xff] %v1681_v49  ;;  %v3538_v49 = vadd.f32 %v1305_v47, %v1217_v0 }
 0x268   : > { %v1698_v60 = vperm.slane %v1557_v40, 0  ;;  %v1699_v58 = vperm.slane %v1557_v40, 1  ;;  %v1700_v51 = vperm.slane %v1557_v40, 2  ;;  %v1705_v33 = vperm.slane %v1557_v40, 7 }
 0x26e   : > { %v1953_v7 = vld [vmem:[#allocation1] sm:$0xff] }
 0x26f   : > { %1954 = vst [vmem:[#allocation1] ss:$9 sm:$0xff] %v1682_v54  ;;  %2186 = vperm.xlu0 %2812, %v1953_v7   ;;  %v1034_v7 = vadd.f32 %v1033_v29, %v3286_v5 }
 0x270   : > { %1955 = vst [vmem:[#allocation1 + $0x1] ss:$9 sm:$0xff] %v1683_v62  ;;  %v1365_v62 = vmax.f32 %v3504_v38, 0.0 }
 0x271   : > { %1956 = vst [vmem:[#allocation1 + $0x2] ss:$9 sm:$0xff] %v1684_v4  ;;  %v1702_v4 = vperm.slane %v1557_v40, 4  ;;  %v1123_v31 = vadd.f32 %v1122_v34, %v1034_v7 }
 0x272   : > { %1957 = vst [vmem:[#allocation1 + $0x3] ss:$9 sm:$0xff] %v1685_v8  ;;  %v1703_v8 = vperm.slane %v1557_v40, 5  ;;  %v1435_v38 = vmul.f32 %v3297_v18, %v1365_v62 }
 0x273   : > { %1958 = vst [vmem:[#allocation1 + $0x4] ss:$9 sm:$0xff] %v1686_v10  ;;  %v1366_v10 = vmax.f32 %v3494_v46, 0.0  ;;  %v1367_v26 = vmax.f32 %v1123_v31, 0.0 }
 0x274   : > { %1959 = vst [vmem:[#allocation1 + $0x5] ss:$9 sm:$0xff] %v1687_v55  ;;  %v1704_v55 = vperm.slane %v1557_v40, 6 }
 0x275   : > { %1960 = vst [vmem:[#allocation1 + $0x6] ss:$9 sm:$0xff] %v1688_v17  ;;  %v1038_v17 = vpop.f32.mrf.mxu2  ;;  %v1436_v46 = vmul.f32 %v3294_v14, %v1366_v10 }
 0x276   : > { %1961 = vst [vmem:[#allocation1 + $0x7] ss:$9 sm:$0xff] %v1689_v11  ;;  %v1039_v11 = vadd.f32 %v1038_v17, %v3286_v5 }
 0x277   : > { %v3554_v24 = vadd.f32 %v1436_v46, %v1435_v38 }
 0x278   : > { %v1128_v59 = vadd.f32 %v1127_v19, %v1039_v11 }
 0x27a   : > { %2174 = vperm.xlu2 %2811, %v3461_v15   ;;  %v1696_v15 = vperm.slane %v1556_v30, 6  ;;  %v1301_v30 = vadd.f32 %v3511_v16, %v1212_v13  ;;  %v1710_v16 = vperm.slane %v1558_v9, 4 }
 0x27c   : > { %v1368_v22 = vmax.f32 %v1301_v30, 0.0  ;;  %v1494_v30 = vpop.xlane.xlu0 %1493 }
 0x27d   : > { %v3528_v28 = vld [vmem:[#allocation1] sm:$0xff] }
 0x27e   : > { %1963 = vst [vmem:[#allocation1] ss:$9 sm:$0xff] %v1690_v57  ;;  %v1437_v57 = vmul.f32 %v3297_v18, %v1367_v26  ;;  %v1438_v29 = vmul.f32 %v3294_v14, %v1368_v22  ;;  %v1561_v22 = vadd.f32 %v3386_v56, %v1494_v30 }
 0x27f   : > { %1964 = vst [vmem:[#allocation1 + $0x1] ss:$9 sm:$0xff] %v1691_v23  ;;  %v1708_v23 = vperm.slane %v1558_v9, 2 }
 0x280   : > { %1965 = vst [vmem:[#allocation1 + $0x2] ss:$9 sm:$0xff] %v1692_v27  ;;  %v1709_v27 = vperm.slane %v1558_v9, 3  ;;  %v1528_v34 = vadd.f32 %v1438_v29, %v1437_v57  ;;  %v1730_v29 = vperm.slane %v1561_v22, 0 }
 0x281   : > { %1966 = vst [vmem:[#allocation1 + $0x3] ss:$9 sm:$0xff] %v1693_v52  ;;  %v1711_v52 = vperm.slane %v1558_v9, 5 }
 0x282   : > { %1967 = vst [vmem:[#allocation1 + $0x4] ss:$9 sm:$0xff] %v1694_v39  ;;  %1514 = vadd.xlane.f32.xlu1 %v1513_v42  ;;  %2180 = vperm.xlu2 %2811, %v3483_v12   ;;  %v1701_v12 = vperm.slane %v1557_v40, 3  ;;  %v1713_v39 = vperm.slane %v1558_v9, 7  ;;  %v1371_v42 = vmax.f32 %v1128_v59, 0.0 }
 0x283   : > { %1968 = vst [vmem:[#allocation1 + $0x5] ss:$9 sm:$0xff] %v1695_v41  ;;  %v1488_v41 = vpop.xlane.xlu1 %1487 }
 0x284   : > { %1969 = vst [vmem:[#allocation1 + $0x6] ss:$9 sm:$0xff] %v1696_v15  ;;  %v1559_v15 = vadd.f32 %v3386_v56, %v1488_v41  ;;  %v1441_v0 = vmul.f32 %v3297_v18, %v1371_v42  ;;  %v1733_v41 = vperm.slane %v1561_v22, 3 }
 0x285   : > { %1970 = vst [vmem:[#allocation1 + $0x7] ss:$9 sm:$0xff] %v1697_v43 }
 0x286   : > { %v1714_v43 = vperm.slane %v1559_v15, 0  ;;  %v1715_v1 = vperm.slane %v1559_v15, 1  ;;  %v1716_v35 = vperm.slane %v1559_v15, 2  ;;  %v1717_v40 = vperm.slane %v1559_v15, 3 }
 0x28c   : > { %v3542_v54 = vld [vmem:[#allocation1] sm:$0xff] }
 0x28d   : > { %1972 = vst [vmem:[#allocation1] ss:$9 sm:$0xff] %v1698_v60 }
 0x28e   : > { %1973 = vst [vmem:[#allocation1 + $0x1] ss:$9 sm:$0xff] %v1699_v58  ;;  %v1718_v58 = vperm.slane %v1559_v15, 4 }
 0x28f   : > { %1974 = vst [vmem:[#allocation1 + $0x2] ss:$9 sm:$0xff] %v1700_v51  ;;  %v1719_v51 = vperm.slane %v1559_v15, 5 }
 0x290   : > { %1975 = vst [vmem:[#allocation1 + $0x3] ss:$9 sm:$0xff] %v1701_v12  ;;  %v1720_v12 = vperm.slane %v1559_v15, 6 }
 0x291   : > { %1976 = vst [vmem:[#allocation1 + $0x4] ss:$9 sm:$0xff] %v1702_v4  ;;  %v1491_v4 = vpop.xlane.xlu2 %1490 }
 0x292   : > { %1977 = vst [vmem:[#allocation1 + $0x5] ss:$9 sm:$0xff] %v1703_v8  ;;  %v1560_v7 = vadd.f32 %v3386_v56, %v1491_v4  ;;  %v1029_v8 = vadd.f32 %v3492_v20, %v3286_v5 }
 0x293   : > { %1978 = vst [vmem:[#allocation1 + $0x6] ss:$9 sm:$0xff] %v1704_v55 }
 0x294   : > { %1979 = vst [vmem:[#allocation1 + $0x7] ss:$9 sm:$0xff] %v1705_v33  ;;  %v1722_v10 = vperm.slane %v1560_v7, 0  ;;  %v1118_v13 = vadd.f32 %v3497_v53, %v1029_v8  ;;  %v1723_v55 = vperm.slane %v1560_v7, 1  ;;  %v1724_v17 = vperm.slane %v1560_v7, 2  ;;  %v1497_v53 = vpop.xlane.xlu1 %1496 }
 0x295   : > { %v1725_v38 = vperm.slane %v1560_v7, 3  ;;  %v1726_v31 = vperm.slane %v1560_v7, 4  ;;  %v1727_v19 = vperm.slane %v1560_v7, 5  ;;  %v1728_v20 = vperm.slane %v1560_v7, 6 }
 0x296   : > { %v1363_v45 = vmax.f32 %v1118_v13, 0.0  ;;  %v1729_v46 = vperm.slane %v1560_v7, 7  ;;  %v1562_v4 = vadd.f32 %v3386_v56, %v1497_v53 }
 0x298   : > { %v1433_v9 = vmul.f32 %v3297_v18, %v1363_v45  ;;  %v1739_v13 = vperm.slane %v1562_v4, 1 }
 0x299   : > { %1529 = vadd.xlane.f32.xlu0 %v1528_v34 }
 0x29b   : > { %v1980_v32 = vld [vmem:[#allocation1] sm:$0xff]  ;;  %2183 = vperm.xlu1 %2813, %v3501_v44   ;;  %v1372_v44 = vmax.f32 %v3538_v49, 0.0  ;;  %v1721_v49 = vperm.slane %v1559_v15, 7 }
 0x29c   : > { %1981 = vst [vmem:[#allocation1] ss:$9 sm:$0xff] %v1706_v63  ;;  %v2163_v63 = vpop.permute.xlu2 %2162  ;;  %v2169_v34 = vpop.permute.xlu1 %2168 }
 0x29d   : > { %1982 = vst [vmem:[#allocation1 + $0x1] ss:$9 sm:$0xff] %v1707_v2  ;;  %v1442_v60 = vmul.f32 %v3294_v14, %v1372_v44  ;;  %v1734_v44 = vperm.slane %v1561_v22, 4 }
 0x29e   : > { %1983 = vst [vmem:[#allocation1 + $0x2] ss:$9 sm:$0xff] %v1708_v23 }
 0x29f   : > { %1984 = vst [vmem:[#allocation1 + $0x3] ss:$9 sm:$0xff] %v1709_v27  ;;  %v3566_v62 = vadd.f32 %v1442_v60, %v1441_v0  ;;  %v1731_v27 = vperm.slane %v1561_v22, 1  ;;  %v1737_v60 = vperm.slane %v1561_v22, 7 }
 0x2a0   : > { %1985 = vst [vmem:[#allocation1 + $0x4] ss:$9 sm:$0xff] %v1710_v16 }
 0x2a1   : > { %1986 = vst [vmem:[#allocation1 + $0x5] ss:$9 sm:$0xff] %v1711_v52 }
 0x2a2   : > { %1987 = vst [vmem:[#allocation1 + $0x6] ss:$9 sm:$0xff] %v1712_v37  ;;  %v1732_v37 = vperm.slane %v1561_v22, 2 }
 0x2a3   : > { %1988 = vst [vmem:[#allocation1 + $0x7] ss:$9 sm:$0xff] %v1713_v39 }
 0x2aa   : > { %v3562_v47 = vld [vmem:[#allocation1] sm:$0xff] }
 0x2ab   : > { %1990 = vst [vmem:[#allocation1] ss:$9 sm:$0xff] %v1714_v43  ;;  %1517 = vadd.xlane.f32.xlu2 %v3530_v36  ;;  %v1207_v36 = vadd.f32 %v3476_v61, %v3281_v3  ;;  %v2257_v61 = vlaneseq  ;;  %v1219_v43 = vpop.f32.mrf.mxu0 }
 0x2ac   : > { %1991 = vst [vmem:[#allocation1 + $0x1] ss:$9 sm:$0xff] %v1715_v1  ;;  %v1735_v1 = vperm.slane %v1561_v22, 5 }
 0x2ad   : > { %1992 = vst [vmem:[#allocation1 + $0x2] ss:$9 sm:$0xff] %v1716_v35  ;;  %2195 = vperm.xlu0 %2812, %v1980_v32   ;;  %v1296_v33 = vadd.f32 %v3479_v6, %v1207_v36  ;;  %v3580_v26 = vand.u32 127, %v2257_v61  ;;  %v2166_v32 = vpop.permute.xlu0 %2165  ;;  %v1738_v36 = vperm.slane %v1562_v4, 0 }
 0x2ae   : > { %1993 = vst [vmem:[#allocation1 + $0x3] ss:$9 sm:$0xff] %v1717_v40  ;;  %v1736_v40 = vperm.slane %v1561_v22, 6 }
 0x2af   : > { %1994 = vst [vmem:[#allocation1 + $0x4] ss:$9 sm:$0xff] %v1718_v58  ;;  %v1364_v59 = vmax.f32 %v1296_v33, 0.0  ;;  %v3585_v2 = vadd.s32 4294967288, %v3580_v26  ;;  %v2259_v23 = vperm.slane %v2163_v63, %v3580_v26  ;;  %v3590_v52 = vadd.s32 4294967280, %v3580_v26 }
 0x2b0   : > { %1995 = vst [vmem:[#allocation1 + $0x5] ss:$9 sm:$0xff] %v1719_v51  ;;  %v1220_v58 = vadd.f32 %v1219_v43, %v3281_v3  ;;  %v1130_v51 = vpop.f32.mrf.mxu3  ;;  %v3607_v22 = vadd.s32 4294967272, %v3580_v26  ;;  %v1037_v43 = vadd.f32 %v3536_v48, %v3286_v5 }
 0x2b1   : > { %1996 = vst [vmem:[#allocation1 + $0x6] ss:$9 sm:$0xff] %v1720_v12  ;;  %v1434_v6 = vmul.f32 %v3294_v14, %v1364_v59  ;;  %v2261_v16 = vperm.slane %v2166_v32, %v3585_v2  ;;  %v2265_v42 = vperm.slane %v2169_v34, %v3590_v52  ;;  %v1500_v59 = vpop.xlane.xlu2 %1499 }
 0x2b2   : > { %1997 = vst [vmem:[#allocation1 + $0x7] ss:$9 sm:$0xff] %v1721_v49  ;;  %v1308_v49 = vpop.f32.mrf.mxu1  ;;  %v1563_v53 = vadd.f32 %v3386_v56, %v1500_v59 }
 0x2b3   : > { %v1522_v57 = vadd.f32 %v1434_v6, %v1433_v9  ;;  %v2263_v15 = vsel %vm2262_vm0, %v2261_v16, %v2259_v23  ;;  %v1309_v7 = vadd.f32 %v1308_v49, %v1220_v58  ;;  %v1506_v58 = vpop.xlane.xlu1 %1505 }
 0x2b4   : > { %v2267_v35 = vsel %vm2266_vm1, %v2265_v42, %v2263_v15  ;;  %v1746_v9 = vperm.slane %v1563_v53, 0  ;;  %v1747_v6 = vperm.slane %v1563_v53, 1  ;;  %v1751_v16 = vperm.slane %v1563_v53, 5 }
 0x2b5   : > { %v1752_v34 = vperm.slane %v1563_v53, 6 }
 0x2b9   : > { %v3575_v11 = vld [vmem:[#allocation1] sm:$0xff]  ;;  %v2172_v63 = vpop.permute.xlu2 %2171 }
 0x2ba   : > { %1999 = vst [vmem:[#allocation1] ss:$9 sm:$0xff] %v1722_v10  ;;  %v1374_v10 = vmax.f32 %v1309_v7, 0.0  ;;  %v2269_v32 = vperm.slane %v2172_v63, %v3607_v22 }
 0x2bb   : > { %2000 = vst [vmem:[#allocation1 + $0x1] ss:$9 sm:$0xff] %v1723_v55  ;;  %v1740_v55 = vperm.slane %v1562_v4, 2 }
 0x2bc   : > { %2001 = vst [vmem:[#allocation1 + $0x2] ss:$9 sm:$0xff] %v1724_v17  ;;  %v1444_v45 = vmul.f32 %v3294_v14, %v1374_v10 }
 0x2bd   : > { %2002 = vst [vmem:[#allocation1 + $0x3] ss:$9 sm:$0xff] %v1725_v38  ;;  %v1741_v38 = vperm.slane %v1562_v4, 3 }
 0x2be   : > { %2003 = vst [vmem:[#allocation1 + $0x4] ss:$9 sm:$0xff] %v1726_v31  ;;  %v1742_v31 = vperm.slane %v1562_v4, 4 }
 0x2bf   : > { %2004 = vst [vmem:[#allocation1 + $0x5] ss:$9 sm:$0xff] %v1727_v19  ;;  %v1743_v19 = vperm.slane %v1562_v4, 5 }
 0x2c0   : > { %2005 = vst [vmem:[#allocation1 + $0x6] ss:$9 sm:$0xff] %v1728_v20  ;;  %v1744_v20 = vperm.slane %v1562_v4, 6 }
 0x2c1   : > { %2006 = vst [vmem:[#allocation1 + $0x7] ss:$9 sm:$0xff] %v1729_v46  ;;  %v1745_v46 = vperm.slane %v1562_v4, 7 }
 0x2c3   : > { %2189 = vperm.xlu2 %2811, %v3528_v28   ;;  %v1041_v28 = vpop.f32.mrf.mxu2 }
 0x2c4   : > { %v1042_v0 = vadd.f32 %v1041_v28, %v3286_v5  ;;  %v1503_v28 = vpop.xlane.xlu0 %1502 }
 0x2c5   : > { %1523 = vadd.xlane.f32.xlu1 %v1522_v57  ;;  %v1748_v57 = vperm.slane %v1563_v53, 2 }
 0x2c6   : > { %v1131_v12 = vadd.f32 %v1130_v51, %v1042_v0 }
 0x2c8   : > { %v3592_v39 = vld [vmem:[#allocation1] sm:$0xff]  ;;  %v1373_v8 = vmax.f32 %v1131_v12, 0.0  ;;  %v1565_v12 = vadd.f32 %v3386_v56, %v1506_v58 }
 0x2c9   : > { %2008 = vst [vmem:[#allocation1] ss:$9 sm:$0xff] %v1730_v29  ;;  %v1749_v29 = vperm.slane %v1563_v53, 3 }
 0x2ca   : > { %2009 = vst [vmem:[#allocation1 + $0x1] ss:$9 sm:$0xff] %v1731_v27  ;;  %v1443_v17 = vmul.f32 %v3297_v18, %v1373_v8  ;;  %v1750_v27 = vperm.slane %v1563_v53, 4  ;;  %v1762_v4 = vperm.slane %v1565_v12, 0  ;;  %v1763_v8 = vperm.slane %v1565_v12, 1 }
 0x2cb   : > { %2010 = vst [vmem:[#allocation1 + $0x2] ss:$9 sm:$0xff] %v1732_v37  ;;  %v1753_v37 = vperm.slane %v1563_v53, 7 }
 0x2cc   : > { %2011 = vst [vmem:[#allocation1 + $0x3] ss:$9 sm:$0xff] %v1733_v41  ;;  %v1537_v30 = vadd.f32 %v1444_v45, %v1443_v17  ;;  %v1564_v41 = vadd.f32 %v3386_v56, %v1503_v28  ;;  %v1769_v45 = vperm.slane %v1565_v12, 7 }
 0x2cd   : > { %2012 = vst [vmem:[#allocation1 + $0x4] ss:$9 sm:$0xff] %v1734_v44 }
 0x2ce   : > { %2013 = vst [vmem:[#allocation1 + $0x5] ss:$9 sm:$0xff] %v1735_v1  ;;  %v1754_v15 = vperm.slane %v1564_v41, 0  ;;  %v1755_v44 = vperm.slane %v1564_v41, 1  ;;  %v1756_v1 = vperm.slane %v1564_v41, 2  ;;  %v1758_v0 = vperm.slane %v1564_v41, 4 }
 0x2cf   : > { %2014 = vst [vmem:[#allocation1 + $0x6] ss:$9 sm:$0xff] %v1736_v40  ;;  %v1759_v40 = vperm.slane %v1564_v41, 5  ;;  %v1761_v51 = vperm.slane %v1564_v41, 7 }
 0x2d0   : > { %2015 = vst [vmem:[#allocation1 + $0x7] ss:$9 sm:$0xff] %v1737_v60  ;;  %v1760_v60 = vperm.slane %v1564_v41, 6 }
 0x2d7   : > { %v3601_v33 = vld [vmem:[#allocation1] sm:$0xff]  ;;  %1538 = vadd.xlane.f32.xlu0 %v1537_v30  ;;  %v3635_v30 = vadd.s32 4294967264, %v3580_v26 }
 0x2d8   : > { %2017 = vst [vmem:[#allocation1] ss:$9 sm:$0xff] %v1738_v36  ;;  %v1764_v36 = vperm.slane %v1565_v12, 2 }
 0x2d9   : > { %2018 = vst [vmem:[#allocation1 + $0x1] ss:$9 sm:$0xff] %v1739_v13  ;;  %v1765_v13 = vperm.slane %v1565_v12, 3 }
 0x2da   : > { %2019 = vst [vmem:[#allocation1 + $0x2] ss:$9 sm:$0xff] %v1740_v55  ;;  %v1766_v55 = vperm.slane %v1565_v12, 4 }
 0x2db   : > { %2020 = vst [vmem:[#allocation1 + $0x3] ss:$9 sm:$0xff] %v1741_v38  ;;  %v1768_v38 = vperm.slane %v1565_v12, 6 }
 0x2dc   : > { %2021 = vst [vmem:[#allocation1 + $0x4] ss:$9 sm:$0xff] %v1742_v31  ;;  %v1509_v31 = vpop.xlane.xlu2 %1508 }
 0x2dd   : > { %2022 = vst [vmem:[#allocation1 + $0x5] ss:$9 sm:$0xff] %v1743_v19  ;;  %v1566_v19 = vadd.f32 %v3386_v56, %v1509_v31 }
 0x2de   : > { %2023 = vst [vmem:[#allocation1 + $0x6] ss:$9 sm:$0xff] %v1744_v20  ;;  %2192 = vperm.xlu1 %2813, %v3542_v54   ;;  %v3613_v54 = vsel %vm2270_vm2, %v2269_v32, %v2267_v35  ;;  %v1757_v35 = vperm.slane %v1564_v41, 3  ;;  %v3632_v20 = vadd.s32 4294967256, %v3580_v26 }
 0x2df   : > { %2024 = vst [vmem:[#allocation1 + $0x7] ss:$9 sm:$0xff] %v1745_v46  ;;  %v1770_v59 = vperm.slane %v1566_v19, 0  ;;  %v1771_v46 = vperm.slane %v1566_v19, 1  ;;  %v1773_v63 = vperm.slane %v1566_v19, 3  ;;  %v1774_v32 = vperm.slane %v1566_v19, 4 }
 0x2e0   : > { %v1777_v41 = vperm.slane %v1566_v19, 7 }
 0x2e4   : > { %v2175_v53 = vpop.permute.xlu2 %2174 }
 0x2e6   : > { %v3609_v23 = vld [vmem:[#allocation1] sm:$0xff] }
 0x2e7   : > { %2026 = vst [vmem:[#allocation1] ss:$9 sm:$0xff] %v1746_v9  ;;  %v1772_v9 = vperm.slane %v1566_v19, 2 }
 0x2e8   : > { %2027 = vst [vmem:[#allocation1 + $0x1] ss:$9 sm:$0xff] %v1747_v6 }
 0x2e9   : > { %2028 = vst [vmem:[#allocation1 + $0x2] ss:$9 sm:$0xff] %v1748_v57  ;;  %v2273_v57 = vperm.slane %v2175_v53, %v3635_v30 }
 0x2ea   : > { %2029 = vst [vmem:[#allocation1 + $0x3] ss:$9 sm:$0xff] %v1749_v29 }
 0x2eb   : > { %2030 = vst [vmem:[#allocation1 + $0x4] ss:$9 sm:$0xff] %v1750_v27  ;;  %2204 = vperm.xlu0 %2812, %v3592_v39   ;;  %v1126_v39 = vadd.f32 %v3540_v50, %v1037_v43  ;;  %v1775_v27 = vperm.slane %v1566_v19, 5 }
 0x2ec   : > { %2031 = vst [vmem:[#allocation1 + $0x5] ss:$9 sm:$0xff] %v1751_v16  ;;  %1526 = vadd.xlane.f32.xlu2 %v3554_v24  ;;  %v1215_v24 = vadd.f32 %v3520_v21, %v3281_v3  ;;  %v2275_v16 = vsel %vm2274_vm3, %v2273_v57, %v3613_v54 }
 0x2ed   : > { %2032 = vst [vmem:[#allocation1 + $0x6] ss:$9 sm:$0xff] %v1752_v34  ;;  %v1369_v49 = vmax.f32 %v1126_v39, 0.0  ;;  %v1776_v34 = vperm.slane %v1566_v19, 6  ;;  %v1043_v19 = vpop.f32.mrf.mxu2 }
 0x2ee   : > { %2033 = vst [vmem:[#allocation1 + $0x7] ss:$9 sm:$0xff] %v1753_v37  ;;  %v1304_v48 = vadd.f32 %v3523_v25, %v1215_v24  ;;  %v1767_v25 = vperm.slane %v1565_v12, 5  ;;  %v3644_v37 = vadd.s32 4294967248, %v3580_v26 }
 0x2ef   : > { %v1439_v7 = vmul.f32 %v3297_v18, %v1369_v49 }
 0x2f0   : > { %v1370_v21 = vmax.f32 %v1304_v48, 0.0 }
 0x2f2   : > { %v1440_v50 = vmul.f32 %v3294_v14, %v1370_v21 }
 0x2f4   : > { %v1531_v17 = vadd.f32 %v1440_v50, %v1439_v7 }
 0x2f5   : > { %v2034_v42 = vld [vmem:[#allocation1] sm:$0xff] }
 0x2f6   : > { %2035 = vst [vmem:[#allocation1] ss:$9 sm:$0xff] %v1754_v15  ;;  %2213 = vperm.xlu0 %2812, %v2034_v42   ;;  %v2181_v42 = vpop.permute.xlu2 %2180 }
 0x2f7   : > { %2036 = vst [vmem:[#allocation1 + $0x1] ss:$9 sm:$0xff] %v1755_v44  ;;  %v1512_v44 = vpop.xlane.xlu0 %1511  ;;  %v2281_v43 = vperm.slane %v2181_v42, %v3644_v37 }
 0x2f8   : > { %2037 = vst [vmem:[#allocation1 + $0x2] ss:$9 sm:$0xff] %v1756_v1  ;;  %v1567_v1 = vadd.f32 %v3386_v56, %v1512_v44 }
 0x2f9   : > { %2038 = vst [vmem:[#allocation1 + $0x3] ss:$9 sm:$0xff] %v1757_v35  ;;  %v3651_v35 = vadd.s32 4294967240, %v3580_v26 }
 0x2fa   : > { %2039 = vst [vmem:[#allocation1 + $0x4] ss:$9 sm:$0xff] %v1758_v0  ;;  %v1778_v0 = vperm.slane %v1567_v1, 0  ;;  %v1780_v58 = vperm.slane %v1567_v1, 2  ;;  %v1782_v12 = vperm.slane %v1567_v1, 4  ;;  %v1783_v49 = vperm.slane %v1567_v1, 5 }
 0x2fb   : > { %2040 = vst [vmem:[#allocation1 + $0x5] ss:$9 sm:$0xff] %v1759_v40  ;;  %v1779_v40 = vperm.slane %v1567_v1, 1  ;;  %v1784_v21 = vperm.slane %v1567_v1, 6 }
 0x2fc   : > { %2041 = vst [vmem:[#allocation1 + $0x6] ss:$9 sm:$0xff] %v1760_v60 }
 0x2fd   : > { %2042 = vst [vmem:[#allocation1 + $0x7] ss:$9 sm:$0xff] %v1761_v51  ;;  %v1781_v51 = vperm.slane %v1567_v1, 3 }
 0x304   : > { %v3627_v10 = vld [vmem:[#allocation1] sm:$0xff]  ;;  %2198 = vperm.xlu2 %2811, %v3562_v47   ;;  %v2178_v47 = vpop.permute.xlu1 %2177 }
 0x305   : > { %2044 = vst [vmem:[#allocation1] ss:$9 sm:$0xff] %v1762_v4  ;;  %v2277_v29 = vperm.slane %v2178_v47, %v3632_v20  ;;  %v1785_v4 = vperm.slane %v1567_v1, 7  ;;  %v1044_v47 = vadd.f32 %v1043_v19, %v3286_v5 }
 0x306   : > { %2045 = vst [vmem:[#allocation1 + $0x1] ss:$9 sm:$0xff] %v1763_v8 }
 0x307   : > { %2046 = vst [vmem:[#allocation1 + $0x2] ss:$9 sm:$0xff] %v1764_v36  ;;  %v2279_v28 = vsel %vm2278_vm4, %v2277_v29, %v2275_v16 }
 0x308   : > { %2047 = vst [vmem:[#allocation1 + $0x3] ss:$9 sm:$0xff] %v1765_v13  ;;  %1532 = vadd.xlane.f32.xlu1 %v1531_v17  ;;  %v2283_v54 = vsel %vm2282_vm5, %v2281_v43, %v2279_v28 }
 0x309   : > { %2048 = vst [vmem:[#allocation1 + $0x4] ss:$9 sm:$0xff] %v1766_v55  ;;  %v1521_v55 = vpop.xlane.xlu0 %1520 }
 0x30a   : > { %2049 = vst [vmem:[#allocation1 + $0x5] ss:$9 sm:$0xff] %v1767_v25 }
 0x30b   : > { %2050 = vst [vmem:[#allocation1 + $0x6] ss:$9 sm:$0xff] %v1768_v38 }
 0x30c   : > { %2051 = vst [vmem:[#allocation1 + $0x7] ss:$9 sm:$0xff] %v1769_v45  ;;  %v1515_v15 = vpop.xlane.xlu1 %1514 }
 0x311   : > { %v2187_v53 = vpop.permute.xlu0 %2186 }
 0x313   : > { %v3637_v6 = vld [vmem:[#allocation1] sm:$0xff] }
 0x314   : > { %2053 = vst [vmem:[#allocation1] ss:$9 sm:$0xff] %v1770_v59  ;;  %v2184_v24 = vpop.permute.xlu1 %2183  ;;  %v3662_v59 = vadd.s32 4294967232, %v3580_v26 }
 0x315   : > { %2054 = vst [vmem:[#allocation1 + $0x1] ss:$9 sm:$0xff] %v1771_v46  ;;  %v2285_v60 = vperm.slane %v2184_v24, %v3651_v35 }
 0x316   : > { %2055 = vst [vmem:[#allocation1 + $0x2] ss:$9 sm:$0xff] %v1772_v9  ;;  %v2289_v29 = vperm.slane %v2187_v53, %v3662_v59 }
 0x317   : > { %2056 = vst [vmem:[#allocation1 + $0x3] ss:$9 sm:$0xff] %v1773_v63  ;;  %v2287_v48 = vsel %vm2286_vm6, %v2285_v60, %v2283_v54  ;;  %v1132_v63 = vpop.f32.mrf.mxu3 }
 0x318   : > { %2057 = vst [vmem:[#allocation1 + $0x4] ss:$9 sm:$0xff] %v1774_v32  ;;  %v1133_v57 = vadd.f32 %v1132_v63, %v1044_v47 }
 0x319   : > { %2058 = vst [vmem:[#allocation1 + $0x5] ss:$9 sm:$0xff] %v1775_v27  ;;  %v1310_v27 = vpop.f32.mrf.mxu1 }
 0x31a   : > { %2059 = vst [vmem:[#allocation1 + $0x6] ss:$9 sm:$0xff] %v1776_v34  ;;  %v3668_v34 = vadd.s32 4294967224, %v3580_v26  ;;  %v1375_v43 = vmax.f32 %v1133_v57, 0.0 }
 0x31b   : > { %2060 = vst [vmem:[#allocation1 + $0x7] ss:$9 sm:$0xff] %v1777_v41 }
 0x31c   : > { %v1445_v60 = vmul.f32 %v3297_v18, %v1375_v43 }
 0x31e   : > { %v1518_v31 = vpop.xlane.xlu2 %1517 }
 0x31f   : > { %v1569_v46 = vadd.f32 %v3386_v56, %v1518_v31 }
 0x321   : > { %2201 = vperm.xlu1 %2813, %v3575_v11   ;;  %v1568_v11 = vadd.f32 %v3386_v56, %v1515_v15  ;;  %v1794_v32 = vperm.slane %v1569_v46, 0  ;;  %v1795_v16 = vperm.slane %v1569_v46, 1  ;;  %v1796_v41 = vperm.slane %v1569_v46, 2 }
 0x322   : > { %v2061_v39 = vld [vmem:[#allocation1] sm:$0xff]  ;;  %v2291_v15 = vsel %vm2290_vm7, %v2289_v29, %v2287_v48  ;;  %v1798_v54 = vperm.slane %v1569_v46, 4  ;;  %v1799_v1 = vperm.slane %v1569_v46, 5 }
 0x323   : > { %2062 = vst [vmem:[#allocation1] ss:$9 sm:$0xff] %v1778_v0  ;;  %2222 = vperm.xlu0 %2812, %v2061_v39   ;;  %v1786_v7 = vperm.slane %v1568_v11, 0  ;;  %v1787_v8 = vperm.slane %v1568_v11, 1  ;;  %v1788_v36 = vperm.slane %v1568_v11, 2  ;;  %v1789_v13 = vperm.slane %v1568_v11, 3 }
 0x324   : > { %2063 = vst [vmem:[#allocation1 + $0x1] ss:$9 sm:$0xff] %v1779_v40  ;;  %v1790_v25 = vperm.slane %v1568_v11, 4  ;;  %v1791_v17 = vperm.slane %v1568_v11, 5  ;;  %v1792_v38 = vperm.slane %v1568_v11, 6  ;;  %v1793_v45 = vperm.slane %v1568_v11, 7 }
 0x325   : > { %2064 = vst [vmem:[#allocation1 + $0x2] ss:$9 sm:$0xff] %v1780_v58  ;;  %v1800_v40 = vperm.slane %v1569_v46, 6  ;;  %v1801_v39 = vperm.slane %v1569_v46, 7 }
 0x326   : > { %2065 = vst [vmem:[#allocation1 + $0x3] ss:$9 sm:$0xff] %v1781_v51  ;;  %v2190_v5 = vpop.permute.xlu2 %2189 }
 0x327   : > { %2066 = vst [vmem:[#allocation1 + $0x4] ss:$9 sm:$0xff] %v1782_v12  ;;  %v2293_v44 = vperm.slane %v2190_v5, %v3668_v34  ;;  %v1570_v12 = vadd.f32 %v3386_v56, %v1521_v55 }
 0x328   : > { %2067 = vst [vmem:[#allocation1 + $0x5] ss:$9 sm:$0xff] %v1783_v49  ;;  %v3680_v49 = vadd.s32 4294967216, %v3580_v26 }
 0x329   : > { %2068 = vst [vmem:[#allocation1 + $0x6] ss:$9 sm:$0xff] %v1784_v21  ;;  %v2295_v24 = vsel %vm2294_vm8, %v2293_v44, %v2291_v15  ;;  %v1802_v21 = vperm.slane %v1570_v12, 0  ;;  %v1803_v18 = vperm.slane %v1570_v12, 1  ;;  %v1804_v11 = vperm.slane %v1570_v12, 2 }
 0x32a   : > { %2069 = vst [vmem:[#allocation1 + $0x7] ss:$9 sm:$0xff] %v1785_v4  ;;  %v1809_v55 = vperm.slane %v1570_v12, 7  ;;  %v3697_v15 = vadd.s32 4294967200, %v3580_v26 }
 0x32d   : > { %1535 = vadd.xlane.f32.xlu2 %v3566_v62  ;;  %v1221_v62 = vpop.f32.mrf.mxu0 }
 0x32e   : > { %v1222_v9 = vadd.f32 %v1221_v62, %v3281_v3  ;;  %v1797_v3 = vperm.slane %v1569_v46, 3 }
 0x330   : > { %v1311_v28 = vadd.f32 %v1310_v27, %v1222_v9  ;;  %v3690_v9 = vadd.s32 4294967208, %v3580_v26 }
 0x331   : > { %v3658_v50 = vld [vmem:[#allocation1] sm:$0xff] }
 0x332   : > { %2071 = vst [vmem:[#allocation1] ss:$9 sm:$0xff] %v1786_v7  ;;  %v1376_v0 = vmax.f32 %v1311_v28, 0.0 }
 0x333   : > { %2072 = vst [vmem:[#allocation1 + $0x1] ss:$9 sm:$0xff] %v1787_v8  ;;  %v1806_v8 = vperm.slane %v1570_v12, 4 }
 0x334   : > { %2073 = vst [vmem:[#allocation1 + $0x2] ss:$9 sm:$0xff] %v1788_v36  ;;  %v1446_v58 = vmul.f32 %v3294_v14, %v1376_v0  ;;  %v1805_v14 = vperm.slane %v1570_v12, 3  ;;  %v1807_v36 = vperm.slane %v1570_v12, 5 }
 0x335   : > { %2074 = vst [vmem:[#allocation1 + $0x3] ss:$9 sm:$0xff] %v1789_v13  ;;  %v1808_v13 = vperm.slane %v1570_v12, 6 }
 0x336   : > { %2075 = vst [vmem:[#allocation1 + $0x4] ss:$9 sm:$0xff] %v1790_v25  ;;  %v1540_v48 = vadd.f32 %v1446_v58, %v1445_v60 }
 0x337   : > { %2076 = vst [vmem:[#allocation1 + $0x5] ss:$9 sm:$0xff] %v1791_v17 }
 0x338   : > { %2077 = vst [vmem:[#allocation1 + $0x6] ss:$9 sm:$0xff] %v1792_v38  ;;  %v1524_v51 = vpop.xlane.xlu1 %1523 }
 0x339   : > { %2078 = vst [vmem:[#allocation1 + $0x7] ss:$9 sm:$0xff] %v1793_v45  ;;  %v1571_v25 = vadd.f32 %v3386_v56, %v1524_v51 }
 0x33b   : > { %v1810_v17 = vperm.slane %v1571_v25, 0  ;;  %v1811_v31 = vperm.slane %v1571_v25, 1  ;;  %v1812_v45 = vperm.slane %v1571_v25, 2  ;;  %v1813_v19 = vperm.slane %v1571_v25, 3 }
 0x33c   : > { %v1814_v62 = vperm.slane %v1571_v25, 4  ;;  %v1815_v47 = vperm.slane %v1571_v25, 5  ;;  %v1816_v46 = vperm.slane %v1571_v25, 6  ;;  %v1817_v53 = vperm.slane %v1571_v25, 7 }
 0x340   : > { %v3671_v42 = vld [vmem:[#allocation1] sm:$0xff] }
 0x341   : > { %2080 = vst [vmem:[#allocation1] ss:$9 sm:$0xff] %v1794_v32 }
 0x342   : > { %2081 = vst [vmem:[#allocation1 + $0x1] ss:$9 sm:$0xff] %v1795_v16 }
 0x343   : > { %2082 = vst [vmem:[#allocation1 + $0x2] ss:$9 sm:$0xff] %v1796_v41 }
 0x344   : > { %2083 = vst [vmem:[#allocation1 + $0x3] ss:$9 sm:$0xff] %v1797_v3 }
 0x345   : > { %2084 = vst [vmem:[#allocation1 + $0x4] ss:$9 sm:$0xff] %v1798_v54  ;;  %2207 = vperm.xlu2 %2811, %v3601_v33  }
 0x346   : > { %2085 = vst [vmem:[#allocation1 + $0x5] ss:$9 sm:$0xff] %v1799_v1 }
 0x347   : > { %2086 = vst [vmem:[#allocation1 + $0x6] ss:$9 sm:$0xff] %v1800_v40 }
 0x348   : > { %2087 = vst [vmem:[#allocation1 + $0x7] ss:$9 sm:$0xff] %v1801_v39 }
 0x34b   : > { %1541 = vadd.xlane.f32.xlu1 %v1540_v48 }
 0x34d   : > { %2216 = vperm.xlu2 %2811, %v3627_v10  }
 0x34f   : > { %v2088_v4 = vld [vmem:[#allocation1] sm:$0xff] }
 0x350   : > { %2089 = vst [vmem:[#allocation1] ss:$9 sm:$0xff] %v1802_v21  ;;  %2231 = vperm.xlu0 %2812, %v2088_v4   ;;  %v2193_v33 = vpop.permute.xlu1 %2192  ;;  %v3703_v4 = vadd.s32 4294967192, %v3580_v26 }
 0x351   : > { %2090 = vst [vmem:[#allocation1 + $0x1] ss:$9 sm:$0xff] %v1803_v18  ;;  %v2297_v7 = vperm.slane %v2193_v33, %v3680_v49 }
 0x352   : > { %2091 = vst [vmem:[#allocation1 + $0x2] ss:$9 sm:$0xff] %v1804_v11 }
 0x353   : > { %2092 = vst [vmem:[#allocation1 + $0x3] ss:$9 sm:$0xff] %v1805_v14  ;;  %v2299_v10 = vsel %vm2298_vm9, %v2297_v7, %v2295_v24 }
 0x354   : > { %2093 = vst [vmem:[#allocation1 + $0x4] ss:$9 sm:$0xff] %v1806_v8 }
 0x355   : > { %2094 = vst [vmem:[#allocation1 + $0x5] ss:$9 sm:$0xff] %v1807_v36  ;;  %2225 = vperm.xlu2 %2811, %v3658_v50   ;;  %v1530_v50 = vpop.xlane.xlu0 %1529 }
 0x356   : > { %2095 = vst [vmem:[#allocation1 + $0x6] ss:$9 sm:$0xff] %v1808_v13  ;;  %v1573_v24 = vadd.f32 %v3386_v56, %v1530_v50 }
 0x357   : > { %2096 = vst [vmem:[#allocation1 + $0x7] ss:$9 sm:$0xff] %v1809_v55 }
 0x358   : > { %v1826_v0 = vperm.slane %v1573_v24, 0  ;;  %v1827_v40 = vperm.slane %v1573_v24, 1  ;;  %v1828_v60 = vperm.slane %v1573_v24, 2  ;;  %v1829_v58 = vperm.slane %v1573_v24, 3 }
 0x359   : > { %v1830_v48 = vperm.slane %v1573_v24, 4  ;;  %v1831_v12 = vperm.slane %v1573_v24, 5  ;;  %v1832_v21 = vperm.slane %v1573_v24, 6  ;;  %v1833_v18 = vperm.slane %v1573_v24, 7 }
 0x35d   : > { %v2196_v63 = vpop.permute.xlu0 %2195 }
 0x35e   : > { %v2097_v38 = vld [vmem:[#allocation1] sm:$0xff]  ;;  %v2301_v57 = vperm.slane %v2196_v63, %v3690_v9 }
 0x35f   : > { %2098 = vst [vmem:[#allocation1] ss:$9 sm:$0xff] %v1810_v17  ;;  %2234 = vperm.xlu2 %2811, %v2097_v38   ;;  %v1527_v29 = vpop.xlane.xlu2 %1526 }
 0x360   : > { %2099 = vst [vmem:[#allocation1 + $0x1] ss:$9 sm:$0xff] %v1811_v31  ;;  %v1572_v32 = vadd.f32 %v3386_v56, %v1527_v29  ;;  %v2303_v27 = vsel %vm2302_vm10, %v2301_v57, %v2299_v10 }
 0x361   : > { %2100 = vst [vmem:[#allocation1 + $0x2] ss:$9 sm:$0xff] %v1812_v45 }
 0x362   : > { %2101 = vst [vmem:[#allocation1 + $0x3] ss:$9 sm:$0xff] %v1813_v19  ;;  %v1819_v16 = vperm.slane %v1572_v32, 1  ;;  %v1820_v5 = vperm.slane %v1572_v32, 2  ;;  %v1821_v41 = vperm.slane %v1572_v32, 3  ;;  %v1823_v3 = vperm.slane %v1572_v32, 5 }
 0x363   : > { %2102 = vst [vmem:[#allocation1 + $0x4] ss:$9 sm:$0xff] %v1814_v62  ;;  %v1825_v44 = vperm.slane %v1572_v32, 7 }
 0x364   : > { %2103 = vst [vmem:[#allocation1 + $0x5] ss:$9 sm:$0xff] %v1815_v47  ;;  %2210 = vperm.xlu1 %2813, %v3609_v23   ;;  %v1818_v23 = vperm.slane %v1572_v32, 0 }
 0x365   : > { %2104 = vst [vmem:[#allocation1 + $0x6] ss:$9 sm:$0xff] %v1816_v46 }
 0x366   : > { %2105 = vst [vmem:[#allocation1 + $0x7] ss:$9 sm:$0xff] %v1817_v53 }
 0x367   : > { %v2199_v43 = vpop.permute.xlu2 %2198 }
 0x368   : > { %v2305_v54 = vperm.slane %v2199_v43, %v3697_v15 }
 0x36a   : > { %v2307_v1 = vsel %vm2306_vm11, %v2305_v54, %v2303_v27  ;;  %v1539_v27 = vpop.xlane.xlu0 %1538 }
 0x36c   : > { %2219 = vperm.xlu1 %2813, %v3637_v6   ;;  %v1822_v6 = vperm.slane %v1572_v32, 4 }
 0x36d   : > { %v2106_v28 = vld [vmem:[#allocation1] sm:$0xff] }
 0x36e   : > { %2107 = vst [vmem:[#allocation1] ss:$9 sm:$0xff] %v1818_v23  ;;  %v1576_v23 = vadd.f32 %v3386_v56, %v1539_v27 }
 0x36f   : > { %2108 = vst [vmem:[#allocation1 + $0x1] ss:$9 sm:$0xff] %v1819_v16 }
 0x370   : > { %2109 = vst [vmem:[#allocation1 + $0x2] ss:$9 sm:$0xff] %v1820_v5  ;;  %v1850_v16 = vperm.slane %v1576_v23, 0  ;;  %v1851_v5 = vperm.slane %v1576_v23, 1  ;;  %v1857_v43 = vperm.slane %v1576_v23, 7 }
 0x371   : > { %2110 = vst [vmem:[#allocation1 + $0x3] ss:$9 sm:$0xff] %v1821_v41  ;;  %v1852_v41 = vperm.slane %v1576_v23, 2 }
 0x372   : > { %2111 = vst [vmem:[#allocation1 + $0x4] ss:$9 sm:$0xff] %v1822_v6  ;;  %v1853_v6 = vperm.slane %v1576_v23, 3 }
 0x373   : > { %2112 = vst [vmem:[#allocation1 + $0x5] ss:$9 sm:$0xff] %v1823_v3  ;;  %v1854_v3 = vperm.slane %v1576_v23, 4 }
 0x374   : > { %2228 = vperm.xlu1 %2813, %v3671_v42   ;;  %v1824_v42 = vperm.slane %v1572_v32, 6  ;;  %2114 = vst [vmem:[#allocation1 + $0x7] ss:$9 sm:$0xff] %v1825_v44  ;;  %v1856_v44 = vperm.slane %v1576_v23, 6 }
 0x376   : > { %2113 = vst [vmem:[#allocation1 + $0x6] ss:$9 sm:$0xff] %v1824_v42  ;;  %v1855_v42 = vperm.slane %v1576_v23, 5 }
 0x37b   : > { %v1533_v51 = vpop.xlane.xlu1 %1532 }
 0x37c   : > { %2237 = vperm.xlu1 %2813, %v2106_v28   ;;  %v1574_v11 = vadd.f32 %v3386_v56, %v1533_v51 }
 0x37d   : > { %v2115_v39 = vld [vmem:[#allocation1] sm:$0xff] }
 0x37e   : > { %2240 = vperm.xlu0 %2812, %v2115_v39   ;;  %2116 = vst [vmem:[#allocation1] ss:$9 sm:$0xff] %v1826_v0  ;;  %v1834_v7 = vperm.slane %v1574_v11, 0  ;;  %v1835_v8 = vperm.slane %v1574_v11, 1  ;;  %v1836_v13 = vperm.slane %v1574_v11, 2  ;;  %v1837_v55 = vperm.slane %v1574_v11, 3 }
 0x37f   : > { %2117 = vst [vmem:[#allocation1 + $0x1] ss:$9 sm:$0xff] %v1827_v40  ;;  %v1838_v25 = vperm.slane %v1574_v11, 4  ;;  %v1839_v17 = vperm.slane %v1574_v11, 5  ;;  %v1840_v38 = vperm.slane %v1574_v11, 6  ;;  %v1841_v31 = vperm.slane %v1574_v11, 7 }
 0x380   : > { %2118 = vst [vmem:[#allocation1 + $0x2] ss:$9 sm:$0xff] %v1828_v60 }
 0x381   : > { %2119 = vst [vmem:[#allocation1 + $0x3] ss:$9 sm:$0xff] %v1829_v58 }
 0x382   : > { %2120 = vst [vmem:[#allocation1 + $0x4] ss:$9 sm:$0xff] %v1830_v48 }
 0x383   : > { %2121 = vst [vmem:[#allocation1 + $0x5] ss:$9 sm:$0xff] %v1831_v12 }
 0x384   : > { %2122 = vst [vmem:[#allocation1 + $0x6] ss:$9 sm:$0xff] %v1832_v21 }
 0x385   : > { %2123 = vst [vmem:[#allocation1 + $0x7] ss:$9 sm:$0xff] %v1833_v18 }
 0x38c   : > { %v2124_v10 = vld [vmem:[#allocation1] sm:$0xff] }
 0x38d   : > { %2243 = vperm.xlu2 %2811, %v2124_v10   ;;  %2125 = vst [vmem:[#allocation1] ss:$9 sm:$0xff] %v1834_v7 }
 0x38e   : > { %2126 = vst [vmem:[#allocation1 + $0x1] ss:$9 sm:$0xff] %v1835_v8 }
 0x38f   : > { %2127 = vst [vmem:[#allocation1 + $0x2] ss:$9 sm:$0xff] %v1836_v13 }
 0x390   : > { %2128 = vst [vmem:[#allocation1 + $0x3] ss:$9 sm:$0xff] %v1837_v55 }
 0x391   : > { %2129 = vst [vmem:[#allocation1 + $0x4] ss:$9 sm:$0xff] %v1838_v25 }
 0x392   : > { %2130 = vst [vmem:[#allocation1 + $0x5] ss:$9 sm:$0xff] %v1839_v17 }
 0x393   : > { %v2202_v33 = vpop.permute.xlu1 %2201  ;;  %2131 = vst [vmem:[#allocation1 + $0x6] ss:$9 sm:$0xff] %v1840_v38 }
 0x394   : > { %v2309_v14 = vperm.slane %v2202_v33, %v3703_v4  ;;  %2132 = vst [vmem:[#allocation1 + $0x7] ss:$9 sm:$0xff] %v1841_v31 }
 0x396   : > { %v3708_v36 = vsel %vm2310_vm12, %v2309_v14, %v2307_v1 }
 0x39b   : > { %v2133_v53 = vld [vmem:[#allocation1] sm:$0xff] }
 0x39c   : > { %2246 = vperm.xlu1 %2813, %v2133_v53  }
 0x3a0   : > { %v1536_v45 = vpop.xlane.xlu2 %1535 }
 0x3a1   : > { %v1575_v19 = vadd.f32 %v3386_v56, %v1536_v45 }
 0x3a3   : > { %v1842_v62 = vperm.slane %v1575_v19, 0  ;;  %v1843_v47 = vperm.slane %v1575_v19, 1  ;;  %v1844_v46 = vperm.slane %v1575_v19, 2  ;;  %v1845_v50 = vperm.slane %v1575_v19, 3 }
 0x3a4   : > { %v1846_v63 = vperm.slane %v1575_v19, 4  ;;  %v1847_v57 = vperm.slane %v1575_v19, 5  ;;  %v1848_v29 = vperm.slane %v1575_v19, 6  ;;  %v1849_v32 = vperm.slane %v1575_v19, 7 }
 0x3a5   : > { %2134 = vst [vmem:[#allocation1] ss:$9 sm:$0xff] %v1842_v62 }
 0x3a6   : > { %2135 = vst [vmem:[#allocation1 + $0x1] ss:$9 sm:$0xff] %v1843_v47 }
 0x3a7   : > { %2136 = vst [vmem:[#allocation1 + $0x2] ss:$9 sm:$0xff] %v1844_v46 }
 0x3a8   : > { %2137 = vst [vmem:[#allocation1 + $0x3] ss:$9 sm:$0xff] %v1845_v50  ;;  %v3715_v18 = vpop.permute.xlu2 %2207 }
 0x3a9   : > { %2138 = vst [vmem:[#allocation1 + $0x4] ss:$9 sm:$0xff] %v1846_v63 }
 0x3aa   : > { %2139 = vst [vmem:[#allocation1 + $0x5] ss:$9 sm:$0xff] %v1847_v57 }
 0x3ab   : > { %2140 = vst [vmem:[#allocation1 + $0x6] ss:$9 sm:$0xff] %v1848_v29 }
 0x3ac   : > { %2141 = vst [vmem:[#allocation1 + $0x7] ss:$9 sm:$0xff] %v1849_v32 }
 0x3b0   : > { %v2217_v14 = vpop.permute.xlu2 %2216 }
 0x3b1   : > { %v2323_v31 = vperm.slane %v2217_v14, %v3590_v52 }
 0x3b3   : > { %v2142_v28 = vld [vmem:[#allocation1] sm:$0xff] }
 0x3b4   : > { %2249 = vperm.xlu0 %2812, %v2142_v28   ;;  %2143 = vst [vmem:[#allocation1] ss:$9 sm:$0xff] %v1850_v16 }
 0x3b5   : > { %2144 = vst [vmem:[#allocation1 + $0x1] ss:$9 sm:$0xff] %v1851_v5 }
 0x3b6   : > { %2145 = vst [vmem:[#allocation1 + $0x2] ss:$9 sm:$0xff] %v1852_v41 }
 0x3b7   : > { %2146 = vst [vmem:[#allocation1 + $0x3] ss:$9 sm:$0xff] %v1853_v6 }
 0x3b8   : > { %2147 = vst [vmem:[#allocation1 + $0x4] ss:$9 sm:$0xff] %v1854_v3  ;;  %v2226_v10 = vpop.permute.xlu2 %2225 }
 0x3b9   : > { %2148 = vst [vmem:[#allocation1 + $0x5] ss:$9 sm:$0xff] %v1855_v42 }
 0x3ba   : > { %2149 = vst [vmem:[#allocation1 + $0x6] ss:$9 sm:$0xff] %v1856_v44  ;;  %v2312_v44 = vadd.s32 4294967184, %v3580_v26 }
 0x3bb   : > { %2150 = vst [vmem:[#allocation1 + $0x7] ss:$9 sm:$0xff] %v1857_v43 }
 0x3be   : > { %v1542_v54 = vpop.xlane.xlu1 %1541 }
 0x3bf   : > { %v1577_v1 = vadd.f32 %v3386_v56, %v1542_v54  ;;  %v3713_v56 = vpop.permute.xlu0 %2204 }
 0x3c0   : > { %v2235_v50 = vpop.permute.xlu2 %2234 }
 0x3c1   : > { %v1858_v24 = vperm.slane %v1577_v1, 0  ;;  %v1859_v0 = vperm.slane %v1577_v1, 1  ;;  %v1860_v40 = vperm.slane %v1577_v1, 2  ;;  %v1861_v39 = vperm.slane %v1577_v1, 3 }
 0x3c2   : > { %v2151_v60 = vld [vmem:[#allocation1] sm:$0xff]  ;;  %v1862_v58 = vperm.slane %v1577_v1, 4  ;;  %v1863_v51 = vperm.slane %v1577_v1, 5  ;;  %v1864_v48 = vperm.slane %v1577_v1, 6  ;;  %v1865_v12 = vperm.slane %v1577_v1, 7 }
 0x3c3   : > { %2252 = vperm.xlu2 %2811, %v2151_v60   ;;  %2152 = vst [vmem:[#allocation1] ss:$9 sm:$0xff] %v1858_v24  ;;  %v2335_v27 = vperm.slane %v2235_v50, %v3662_v59  ;;  %v2316_v59 = vadd.s32 4294967176, %v3580_v26  ;;  %v2313_v1 = vperm.slane %v3713_v56, %v2312_v44 }
 0x3c4   : > { %2153 = vst [vmem:[#allocation1 + $0x1] ss:$9 sm:$0xff] %v1859_v0 }
 0x3c5   : > { %2154 = vst [vmem:[#allocation1 + $0x2] ss:$9 sm:$0xff] %v1860_v40  ;;  %v2315_v0 = vsel %vm2314_vm13, %v2313_v1, %v3708_v36 }
 0x3c6   : > { %2155 = vst [vmem:[#allocation1 + $0x3] ss:$9 sm:$0xff] %v1861_v39 }
 0x3c7   : > { %2156 = vst [vmem:[#allocation1 + $0x4] ss:$9 sm:$0xff] %v1862_v58  ;;  %v2214_v33 = vpop.permute.xlu0 %2213 }
 0x3c8   : > { %2157 = vst [vmem:[#allocation1 + $0x5] ss:$9 sm:$0xff] %v1863_v51  ;;  %v2321_v55 = vperm.slane %v2214_v33, %v3585_v2  ;;  %v2329_v2 = vperm.slane %v2226_v10, %v3632_v20 }
 0x3c9   : > { %2158 = vst [vmem:[#allocation1 + $0x6] ss:$9 sm:$0xff] %v1864_v48 }
 0x3ca   : > { %2159 = vst [vmem:[#allocation1 + $0x7] ss:$9 sm:$0xff] %v1865_v12 }
 0x3cf   : > { %v2223_v8 = vpop.permute.xlu0 %2222 }
 0x3d0   : > { %v2327_v47 = vperm.slane %v2223_v8, %v3635_v30 }
 0x3d1   : > { %v2160_v21 = vld [vmem:[#allocation1] sm:$0xff] }
 0x3d2   : > { %2255 = vperm.xlu1 %2813, %v2160_v21  }
 0x3d6   : > { %v2211_v11 = vpop.permute.xlu1 %2210 }
 0x3d7   : > { %v2320_v13 = vperm.slane %v2211_v11, %v3580_v26  ;;  %v2232_v45 = vpop.permute.xlu0 %2231 }
 0x3d8   : > { %v2333_v29 = vperm.slane %v2232_v45, %v3651_v35 }
 0x3d9   : > { %v2322_v25 = vsel %vm2262_vm0, %v2321_v55, %v2320_v13  ;;  %vm2357_vm0 = vcmp.lt.s32.totalorder %v2257_v61, 256 }
 0x3da   : > { %v2324_v19 = vsel %vm2266_vm1, %v2323_v31, %v2322_v25 }
 0x3de   : > { %v2220_v7 = vpop.permute.xlu1 %2219 }
 0x3df   : > { %v2325_v17 = vperm.slane %v2220_v7, %v3607_v22 }
 0x3e1   : > { %v2326_v62 = vsel %vm2270_vm2, %v2325_v17, %v2324_v19 }
 0x3e2   : > { %v2328_v46 = vsel %vm2274_vm3, %v2327_v47, %v2326_v62 }
 0x3e3   : > { %v2330_v63 = vsel %vm2278_vm4, %v2329_v2, %v2328_v46 }
 0x3e6   : > { %v2229_v38 = vpop.permute.xlu1 %2228 }
 0x3e7   : > { %v2331_v53 = vperm.slane %v2229_v38, %v3644_v37  ;;  %v2244_v37 = vpop.permute.xlu2 %2243 }
 0x3e8   : > { %v2341_v35 = vperm.slane %v2244_v37, %v3690_v9 }
 0x3e9   : > { %v2332_v57 = vsel %vm2282_vm5, %v2331_v53, %v2330_v63 }
 0x3ea   : > { %v2334_v32 = vsel %vm2286_vm6, %v2333_v29, %v2332_v57 }
 0x3eb   : > { %v2336_v20 = vsel %vm2290_vm7, %v2335_v27, %v2334_v32 }
 0x3ee   : > { %v2238_v22 = vpop.permute.xlu1 %2237 }
 0x3ef   : > { %v2337_v30 = vperm.slane %v2238_v22, %v3668_v34 }
 0x3f0   : > { %v2241_v52 = vpop.permute.xlu0 %2240 }
 0x3f1   : > { %v2338_v23 = vsel %vm2294_vm8, %v2337_v30, %v2336_v20  ;;  %v2339_v5 = vperm.slane %v2241_v52, %v3680_v49 }
 0x3f3   : > { %v2340_v41 = vsel %vm2298_vm9, %v2339_v5, %v2338_v23 }
 0x3f4   : > { %v2342_v34 = vsel %vm2302_vm10, %v2341_v35, %v2340_v41 }
 0x40e   : > { %v2247_v16 = vpop.permute.xlu1 %2246 }
 0x40f   : > { %v2343_v6 = vperm.slane %v2247_v16, %v3697_v15 }
 0x411   : > { %v2344_v49 = vsel %vm2306_vm11, %v2343_v6, %v2342_v34 }
 0x41d   : > { %v2253_v42 = vpop.permute.xlu2 %2252 }
 0x41e   : > { %v2347_v9 = vperm.slane %v2253_v42, %v2312_v44 }
 0x426   : > { %v2250_v28 = vpop.permute.xlu0 %2249 }
 0x427   : > { %v2345_v3 = vperm.slane %v2250_v28, %v3703_v4  ;;  %v2317_v4 = vperm.slane %v3715_v18, %v2316_v59 }
 0x429   : > { %v2346_v43 = vsel %vm2310_vm12, %v2345_v3, %v2344_v49  ;;  %v2319_v39 = vsel %vm2318_vm14, %v2317_v4, %v2315_v0 }
 0x42a   : > { %v2348_v24 = vsel %vm2314_vm13, %v2347_v9, %v2346_v43 }
 0x444   : > { %v2256_v15 = vpop.permute.xlu1 %2255 }
 0x445   : > { %v2349_v54 = vperm.slane %v2256_v15, %v2316_v59 }
 0x447   : > { %v2350_v26 = vsel %vm2318_vm14, %v2349_v54, %v2348_v24 }
 0x448   : > { %v2351_v40 = vrot.slane %v2350_v26, 7 }
 0x44a   : > { %v2353_v60 = vsel %vm2352_vm15, %v2319_v39, %v2351_v40 }
 0x44b   : > { %2359 = vst.msk [vmem:[%s333_s6] sm:$0x3] %vm2357_vm0, %v2353_v60 }
 0x44c   : > { %2931 = shalt.err (!%p2928_p10)
}
 0x44d   : > { %2751 = dma.vmem_to_hbm [thread:$0]  (%p3096_p3), %s2374_s20, 32, %s2376_s12, %s2361_s8  }
 0x44e PF: > { %s2387_s14 = sand.u32 1, %s2962_s26   ;;  %p3801_p12 = scmp.ge.s32.totalorder %s2974_s29, 2 }
 0x44f   : > { %s2388_s17 = scalar_lea.sflag [#allocation5], %s2387_s14 }
 0x450   : > { %p2765_p13 = pnand %p3801_p12, %p3059_p6 }
 0x452   : > { %p2766_p0 = pneg %p2765_p13 }
 0x454   : > { %2957 = dma.done.wait (%p2766_p0), %s2388_s17, 32  }
 0x455   : > { %2959 = vsyncadd (%p2766_p0), %s2388_s17, 4294967264  ;;  %p23_p5 = scmp.ge.s32.totalorder %s3086_s23, 4   ;;  %s3802_s26 = smov %s2966_s27 }
 0x456   : > { %s3803_s27 = smov %s2970_s28  ;;  %s3804_s28 = smov %s3102_s10 }
 0x457   : > { %s3805_s29 = smov %s3086_s23  ;;  %25 = sbr.rel (!%p23_p5) target bundleno = 9 (0x9), region = 108 }
 0x45c   :  { %2394 = vsyncpa [#allocation4], 1 }
 0x45d   :  { %2396 = vsyncpa [#allocation4 + $0x1], 1 }
 0x45e   :  { %2397 = vsyncpa [#allocation7], 1 }
 0x45f   :  { %2398 = vsyncpa [#allocation5], 1 }
 0x460   :  { %2400 = vsyncpa [#allocation5 + $0x1], 1 }

</bundles_post_ra>
